<compile_context>
chip_gen: v6e
topology: v6e:2x2x1
jax: 0.10.0
libtpu: 0.0.40
codegen_flags: <defaults>
</compile_context>

<pallas_src>
import functools

import jax
import jax.numpy as jnp
from jax import lax
from jax.experimental import pallas as pl
from jax.experimental.pallas import tpu as pltpu

HOURS = 24 * 7
TIMESTEPS = 1000
LANE = 128
SUBLANE = 8
BLOCK_B = 8          # samples per grid step


def _round_up(x, m):
    return ((x + m - 1) // m) * m


# ----------------------------------------------------------------------------
# Fused kernel: SelfAttn + candidate Attn for a block of B samples.
#   qkv   = [joint] @ [Wq.T | Wk.T | Wv.T]                (one MXU pass over B*M rows)
#   s     = q k^T + dsum * pairmask ; attn = softmax(s) * pairmask   (mask AFTER softmax,
#                                                                     as in the reference)
#   sde   = attn @ v                                       (reverse_sde pass-through)
#   a     = sde @ cand^T
#   d     = onehot(loc) @ (cs * mat2) + (ct * vec + c0)    (in-VMEM mat2 gather)
#   out_b = sum_m a * d * w_value[m] * (m < len_b)         (dense (B, L) store)
# ----------------------------------------------------------------------------
def _fused_kernel(len_ref, joint_ref, dsum_ref, loc_ref, vece_ref,
                  wqkv_ref, cand_ref, mat2_ref, wval_ref, out_ref, *, m_valid):
    B, M, E = joint_ref.shape
    L = mat2_ref.shape[0]

    length = len_ref[...]                                          # (B, 1, 1) int32

    # ---- SelfAttn: fused QKV projection over all B*M rows -------------------
    joint2 = joint_ref[...].astype(jnp.float32).reshape(B * M, E)  # bf16 stream -> f32
    qkv = jnp.dot(joint2, wqkv_ref[...],
                  preferred_element_type=jnp.float32)              # (B*M, 3E)
    q = qkv[:, :E].reshape(B, M, E)
    k = qkv[:, E:2 * E].reshape(B, M, E)
    v = qkv[:, 2 * E:].reshape(B, M, E)

    i_idx = lax.broadcasted_iota(jnp.int32, (B, M, M), 1)
    j_idx = lax.broadcasted_iota(jnp.int32, (B, M, M), 2)
    pmask = ((i_idx < length) & (j_idx < length)).astype(jnp.float32)

    s = jnp.einsum('bme,bne->bmn', q, k, preferred_element_type=jnp.float32)
    s = s + dsum_ref[...] * pmask
    if m_valid < M:        # keep softmax denominator identical to the unpadded reference
        s = jnp.where(j_idx < m_valid, s, -1e30)
    mx = jnp.max(s, axis=-1, keepdims=True)
    p = jnp.exp(s - mx)
    denom = jnp.sum(p, axis=-1, keepdims=True)
    attn = p * pl.reciprocal(denom, approx=True) * pmask           # mask after softmax
    sde = jnp.einsum('bmn,bne->bme', attn, v, preferred_element_type=jnp.float32)
    # TODO(synk): `self.sde.reverse_sde(...)` is undefined in the reference Model.__init__
    # (upstream bug); treated as a pass-through here.

    # ---- candidate Attn -----------------------------------------------------
    sde2 = sde.reshape(B * M, E)
    a = lax.dot_general(sde2, cand_ref[...], (((1,), (1,)), ((), ())),
                        preferred_element_type=jnp.float32).reshape(B, M, L)

    # in-VMEM gather of mat2 rows via a one-hot matmul (no (N,M,L) HBM tensor)
    onehot = (lax.broadcasted_iota(jnp.int32, (B, M, L), 2)
              == (loc_ref[...] - 1)).astype(jnp.float32)           # (B, M, L)
    delta_s = jnp.dot(onehot.reshape(B * M, L), mat2_ref[...],
                      preferred_element_type=jnp.float32).reshape(B, M, L)
    d = delta_s + vece_ref[...]                                    # + ct*vec + c0

    rmask = (lax.broadcasted_iota(jnp.int32, (B, M, 1), 1) < length).astype(jnp.float32)
    w = rmask * wval_ref[...]                                      # validity * w_value  (B,M,1)

    out_ref[...] = jnp.sum(a * d * w, axis=1)                      # dense (B, L) store


def fused_attn_forward(len3, joint, dsum, loc3, vece3, wqkv, cand, mat2s, wval3,
                       *, block_b, m_valid):
    N_pad, M_pad, E_pad = joint.shape
    L_pad = mat2s.shape[0]
    B = block_b
    G = N_pad // B
    kernel = functools.partial(_fused_kernel, m_valid=m_valid)
    return pl.pallas_call(
        kernel,
        out_shape=jax.ShapeDtypeStruct((N_pad, L_pad), jnp.float32),
        grid_spec=pltpu.PrefetchScalarGridSpec(
            num_scalar_prefetch=0,
            grid=(G,),
            in_specs=[
                pl.BlockSpec((B, 1, 1), lambda g: (g, 0, 0)),          # lengths
                pl.BlockSpec((B, M_pad, E_pad), lambda g: (g, 0, 0)),  # joint (bf16)
                pl.BlockSpec((B, M_pad, M_pad), lambda g: (g, 0, 0)),  # pairwise delta sum
                pl.BlockSpec((B, M_pad, 1), lambda g: (g, 0, 0)),      # loc indices
                pl.BlockSpec((B, M_pad, 1), lambda g: (g, 0, 0)),      # ct*vec + c0
                pl.BlockSpec((E_pad, 3 * E_pad), lambda g: (0, 0)),    # fused QKV (resident)
                pl.BlockSpec((L_pad, E_pad), lambda g: (0, 0)),        # candidate emb (resident)
                pl.BlockSpec((L_pad, L_pad), lambda g: (0, 0)),        # cs*mat2 (resident)
                pl.BlockSpec((1, M_pad, 1), lambda g: (0, 0, 0)),      # w_value (resident)
            ],
            out_specs=pl.BlockSpec((B, L_pad), lambda g: (g, 0)),
        ),
        compiler_params=pltpu.CompilerParams(
            dimension_semantics=("parallel",),
            vmem_limit_bytes=32 * 1024 * 1024,
        ),
    )(len3, joint, dsum, loc3, vece3, wqkv, cand, mat2s, wval3)


# ----------------------------------------------------------------------------
# Host-side glue (embedding gathers, analytic E-collapse, diffusion head).
# ----------------------------------------------------------------------------
def sinusoidal_time_embedding(t, dim):
    half = dim // 2
    freqs = jnp.exp(-jnp.log(10000.0) * jnp.arange(half, dtype=jnp.float32) / half)
    args = t[:, None].astype(jnp.float32) * freqs[None, :]
    return jnp.concatenate([jnp.sin(args), jnp.cos(args)], axis=-1)


def diffusion_forward(params, x, t):
    # TODO(synk): DiffusionModel source is not provided in the reference; this is a minimal
    # sinusoidal-time-conditioned MLP noise predictor with matching in/out shapes.
    temb = sinusoidal_time_embedding(t, params["diff_wt"].shape[1])
    h = x @ params["diff_w1"].T + temb @ params["diff_wt"].T + params["diff_b1"]
    h = jax.nn.silu(h)
    return h @ params["diff_w2"].T + params["diff_b2"]


def model_forward(params, traj, mat1, mat2, vec, traj_len, ex, l_dim, key):
    su, sl, tu, tl = ex
    N, M = traj.shape[0], traj.shape[1]
    L = l_dim - 1
    L_pad, E_pad = params["cand"].shape
    M_pad = params["wval3"].shape[1]
    B = BLOCK_B
    N_pad = _round_up(max(N, B), B)

    # Analytic E-collapse coefficients (padding_idx=0 => emb(mask) == mask * emb[1]).
    ssl = jnp.sum(params["emb_sl"][1]); ssu = jnp.sum(params["emb_su"][1])
    stl = jnp.sum(params["emb_tl"][1]); stu = jnp.sum(params["emb_tu"][1])
    cs = (ssu - ssl) / (su - sl)
    ct = (stu - stl) / (tu - tl)
    c0 = ((ssl * su - ssu * sl) / (su - sl)
          + (stl * tu - stu * tl) / (tu - tl))

    # MultiEmbed: joint embedding (gathers in plain JAX) + E-collapsed pairwise delta.
    time_idx = (traj[:, :, 2] - 1) % HOURS + 1
    joint = (params["emb_t"][time_idx]
             + params["emb_l"][traj[:, :, 1]]
             + params["emb_u"][traj[:, :, 0]]).astype(jnp.bfloat16)   # (N, M, E_pad)
    dsum = (cs * mat1[..., 0] + ct * mat1[..., 1] + c0).astype(jnp.float32)   # (N, M, M)

    loc3 = traj[:, :, 1:2].astype(jnp.int32)                          # (N, M, 1)
    vece3 = (ct * vec + c0)[:, :, None].astype(jnp.float32)           # (N, M, 1)
    len3 = traj_len.astype(jnp.int32).reshape(N, 1, 1)                # (N, 1, 1)

    # Zero-pad batch / sequence dims to the block grid (padded samples have length 0).
    joint_p = jnp.pad(joint, ((0, N_pad - N), (0, M_pad - M), (0, 0)))
    dsum_p = jnp.pad(dsum, ((0, N_pad - N), (0, M_pad - M), (0, M_pad - M)))
    loc_p = jnp.pad(loc3, ((0, N_pad - N), (0, M_pad - M), (0, 0)))
    vece_p = jnp.pad(vece3, ((0, N_pad - N), (0, M_pad - M), (0, 0)))
    len_p = jnp.pad(len3, ((0, N_pad - N), (0, 0), (0, 0)))
    mat2s = jnp.pad(mat2 * cs, ((0, L_pad - L), (0, L_pad - L))).astype(jnp.float32)

    out_pad = fused_attn_forward(len_p, joint_p, dsum_p, loc_p, vece_p,
                                 params["wqkv"], params["cand"], mat2s, params["wval3"],
                                 block_b=B, m_valid=M)
    output = out_pad[:N, :L]                                          # (N, L)

    t = jax.random.randint(key, (N,), 0, TIMESTEPS)
    pred_noise = diffusion_forward(params, output, t)
    return output, pred_noise


def init_params(key, t_dim, l_dim, u_dim, E, max_len):
    ks = jax.random.split(key, 16)
    E_pad = _round_up(E, LANE)
    L = l_dim - 1
    L_pad = _round_up(L, LANE)
    M_pad = _round_up(max_len, SUBLANE)

    def emb(k, vocab):
        w = jax.random.normal(k, (vocab, E), jnp.float32) * 0.02
        w = w.at[0].set(0.0)                                          # padding_idx=0
        return jnp.pad(w, ((0, 0), (0, E_pad - E)))                   # zero-pad embed dim

    emb_l_p = emb(ks[1], l_dim)

    wq = jax.random.normal(ks[7], (E, E), jnp.float32) / jnp.sqrt(E)
    wk = jax.random.normal(ks[8], (E, E), jnp.float32) / jnp.sqrt(E)
    wv = jax.random.normal(ks[9], (E, E), jnp.float32) / jnp.sqrt(E)
    w_value = jax.random.normal(ks[10], (1, max_len), jnp.float32) / jnp.sqrt(max_len)

    def pad_wt(w):  # (E, E) linear weight -> pre-transposed, padded (E_pad, E_pad)
        return jnp.pad(w.T, ((0, E_pad - E), (0, E_pad - E)))

    # Fused, pre-transposed QKV weights and candidate embeddings built once at init.
    wqkv = jnp.concatenate([pad_wt(wq), pad_wt(wk), pad_wt(wv)], axis=1)      # (E_pad, 3E_pad)
    cand = jnp.pad(emb_l_p[1:L + 1], ((0, L_pad - L), (0, 0)))                # (L_pad, E_pad)
    wval3 = jnp.pad(w_value.reshape(1, max_len, 1),
                    ((0, 0), (0, M_pad - max_len), (0, 0)))                   # (1, M_pad, 1)

    return dict(
        emb_t=emb(ks[0], t_dim), emb_l=emb_l_p, emb_u=emb(ks[2], u_dim),
        emb_su=emb(ks[3], 2), emb_sl=emb(ks[4], 2), emb_tu=emb(ks[5], 2), emb_tl=emb(ks[6], 2),
        wqkv=wqkv, cand=cand, wval3=wval3,
        diff_w1=jax.random.normal(ks[11], (E, L), jnp.float32) * 0.05,
        diff_wt=jax.random.normal(ks[12], (E, E), jnp.float32) * 0.05,
        diff_b1=jnp.zeros((E,), jnp.float32),
        diff_w2=jax.random.normal(ks[13], (L, E), jnp.float32) * 0.05,
        diff_b2=jnp.zeros((L,), jnp.float32),
    )


if __name__ == "__main__":
    # Small, self-consistent shapes.
    N, M, E = 2, 8, 32              # batch, max trajectory length, embed_dim
    t_dim, l_dim, u_dim = 10, 9, 5
    L = l_dim - 1                   # 8 candidate locations
    ex = (200.0, 0.0, 50.0, 0.0)    # (su, sl, tu, tl)

    root = jax.random.PRNGKey(0)
    k_param, k_user, k_loc, k_time, k_mat1, k_mat2, k_vec, k_t = jax.random.split(root, 8)

    params = init_params(k_param, t_dim, l_dim, u_dim, E, max_len=M)

    user = jax.random.randint(k_user, (N, M), 1, u_dim)
    loc = jax.random.randint(k_loc, (N, M), 1, l_dim)
    time = jax.random.randint(k_time, (N, M), 1, t_dim)
    traj = jnp.stack([user, loc, time], axis=-1).astype(jnp.int32)     # (N, M, 3)

    mat1 = jax.random.uniform(k_mat1, (N, M, M, 2), jnp.float32,
                              minval=0.0, maxval=10.0)                 # pairwise intervals
    mat2 = jax.random.uniform(k_mat2, (L, L), jnp.float32,
                              minval=0.0, maxval=10.0)                 # loc->candidate distances
    vec = jax.random.uniform(k_vec, (N, M), jnp.float32,
                             minval=0.0, maxval=5.0)
    traj_len = jnp.array([M, 5], dtype=jnp.int32)

    fwd = jax.jit(model_forward, static_argnames=("ex", "l_dim"))
    output, pred_noise = fwd(params, traj, mat1, mat2, vec, traj_len, ex, l_dim, k_t)
    jax.block_until_ready((output, pred_noise))

    assert output.shape == (N, L) and pred_noise.shape == (N, L)
    assert bool(jnp.all(jnp.isfinite(output))) and bool(jnp.all(jnp.isfinite(pred_noise)))
    print("KERNEL_OK")
</pallas_src>

<mosaic_0001>
module attributes {stable_mosaic.version = 11 : i64} {
  func.func @_fused_kernel(%arg0: i32, %arg1: memref<8x1x1xi32, #tpu.memory_space<vmem>>, %arg2: memref<8x8x128xbf16, #tpu.memory_space<vmem>>, %arg3: memref<8x8x8xf32, #tpu.memory_space<vmem>>, %arg4: memref<8x8x1xi32, #tpu.memory_space<vmem>>, %arg5: memref<8x8x1xf32, #tpu.memory_space<vmem>>, %arg6: memref<128x384xf32, #tpu.memory_space<vmem>>, %arg7: memref<128x128xf32, #tpu.memory_space<vmem>>, %arg8: memref<128x128xf32, #tpu.memory_space<vmem>>, %arg9: memref<1x8x1xf32, #tpu.memory_space<vmem>>, %arg10: memref<8x128xf32, #tpu.memory_space<vmem>>) attributes {dimension_semantics = [#tpu.dimension_semantics<parallel>], iteration_bounds = array<i64: 1>, scalar_prefetch = 0 : i64, scratch_operands = 0 : i64, tpu.core_type = #tpu.core_type<tc>, window_params = [{transform_indices = @transform_0, window_bounds = array<i64: 8, 1, 1>}, {transform_indices = @transform_1, window_bounds = array<i64: 8, 8, 128>}, {transform_indices = @transform_2, window_bounds = array<i64: 8, 8, 8>}, {transform_indices = @transform_3, window_bounds = array<i64: 8, 8, 1>}, {transform_indices = @transform_4, window_bounds = array<i64: 8, 8, 1>}, {pipeline_mode = #tpu.pipeline_mode<synchronous>, transform_indices = @transform_5, window_bounds = array<i64: 128, 384>}, {pipeline_mode = #tpu.pipeline_mode<synchronous>, transform_indices = @transform_6, window_bounds = array<i64: 128, 128>}, {pipeline_mode = #tpu.pipeline_mode<synchronous>, transform_indices = @transform_7, window_bounds = array<i64: 128, 128>}, {pipeline_mode = #tpu.pipeline_mode<synchronous>, transform_indices = @transform_8, window_bounds = array<i64: 1, 8, 1>}, {transform_indices = @transform_9, window_bounds = array<i64: 8, 128>}]} {
    %c0 = arith.constant 0 : index
    %c0_0 = arith.constant 0 : index
    %c0_1 = arith.constant 0 : index
    %0 = vector.load %arg1[%c0, %c0_0, %c0_1] : memref<8x1x1xi32, #tpu.memory_space<vmem>>, vector<8x1x1xi32>
    %c0_2 = arith.constant 0 : index
    %c0_3 = arith.constant 0 : index
    %c0_4 = arith.constant 0 : index
    %1 = vector.load %arg2[%c0_2, %c0_3, %c0_4] : memref<8x8x128xbf16, #tpu.memory_space<vmem>>, vector<8x8x128xbf16>
    %2 = arith.extf %1 : vector<8x8x128xbf16> to vector<8x8x128xf32>
    %3 = vector.shape_cast %2 : vector<8x8x128xf32> to vector<64x128xf32>
    %c0_5 = arith.constant 0 : index
    %c0_6 = arith.constant 0 : index
    %4 = vector.load %arg6[%c0_5, %c0_6] : memref<128x384xf32, #tpu.memory_space<vmem>>, vector<128x384xf32>
    %cst = arith.constant dense<0.000000e+00> : vector<64x384xf32>
    %5 = tpu.matmul %3, %4, %cst {dimension_numbers = #tpu.dot_dimension_numbers<[1], [0], [0], [1], [0, 0, 1, 1], [], []>} : vector<64x128xf32>, vector<128x384xf32>, vector<64x384xf32> -> vector<64x384xf32>
    %6 = vector.extract_strided_slice %5 {offsets = [0, 0], sizes = [64, 128], strides = [1, 1]} : vector<64x384xf32> to vector<64x128xf32>
    %7 = vector.shape_cast %6 : vector<64x128xf32> to vector<8x8x128xf32>
    %8 = vector.extract_strided_slice %5 {offsets = [0, 128], sizes = [64, 128], strides = [1, 1]} : vector<64x384xf32> to vector<64x128xf32>
    %9 = vector.shape_cast %8 : vector<64x128xf32> to vector<8x8x128xf32>
    %10 = vector.extract_strided_slice %5 {offsets = [0, 256], sizes = [64, 128], strides = [1, 1]} : vector<64x384xf32> to vector<64x128xf32>
    %11 = vector.shape_cast %10 : vector<64x128xf32> to vector<8x8x128xf32>
    %12 = tpu.iota {dimensions = array<i32: 1>} : vector<8x8x8xi32>
    %13 = tpu.iota {dimensions = array<i32: 2>} : vector<8x8x8xi32>
    %14 = vector.broadcast %0 : vector<8x1x1xi32> to vector<8x8x8xi32>
    %15 = arith.cmpi slt, %12, %14 : vector<8x8x8xi32>
    %16 = vector.broadcast %0 : vector<8x1x1xi32> to vector<8x8x8xi32>
    %17 = arith.cmpi slt, %13, %16 : vector<8x8x8xi32>
    %18 = arith.andi %15, %17 : vector<8x8x8xi1>
    %19 = arith.extui %18 : vector<8x8x8xi1> to vector<8x8x8xi32>
    %20 = arith.sitofp %19 : vector<8x8x8xi32> to vector<8x8x8xf32>
    "tpu.trace_start"() <{level = 10 : i32, message = "bme,bne->bmn"}> : () -> ()
    %cst_7 = arith.constant dense<0.000000e+00> : vector<8x8x8xf32>
    %21 = tpu.matmul %7, %9, %cst_7 {dimension_numbers = #tpu.dot_dimension_numbers<[2], [2], [1], [1], [0, 0, 0, 1, 1, 1], [0], [0]>} : vector<8x8x128xf32>, vector<8x8x128xf32>, vector<8x8x8xf32> -> vector<8x8x8xf32>
    "tpu.trace_stop"() : () -> ()
    %c0_8 = arith.constant 0 : index
    %c0_9 = arith.constant 0 : index
    %c0_10 = arith.constant 0 : index
    %22 = vector.load %arg3[%c0_8, %c0_9, %c0_10] : memref<8x8x8xf32, #tpu.memory_space<vmem>>, vector<8x8x8xf32>
    %23 = arith.mulf %22, %20 : vector<8x8x8xf32>
    %24 = arith.addf %21, %23 : vector<8x8x8xf32>
    %cst_11 = arith.constant dense<0xFF800000> : vector<8x8xf32>
    %25 = vector.multi_reduction <maximumf>, %24, %cst_11 [2] : vector<8x8x8xf32> to vector<8x8xf32>
    %26 = vector.shape_cast %25 : vector<8x8xf32> to vector<8x8x1xf32>
    %27 = vector.broadcast %26 : vector<8x8x1xf32> to vector<8x8x8xf32>
    %28 = arith.subf %24, %27 : vector<8x8x8xf32>
    %29 = math.exp %28 : vector<8x8x8xf32>
    %cst_12 = arith.constant dense<0.000000e+00> : vector<8x8xf32>
    %30 = vector.multi_reduction <add>, %29, %cst_12 [2] : vector<8x8x8xf32> to vector<8x8xf32>
    %31 = vector.shape_cast %30 : vector<8x8xf32> to vector<8x8x1xf32>
    %32 = tpu.reciprocal %31 {approx = true} : vector<8x8x1xf32> -> vector<8x8x1xf32>
    %33 = vector.broadcast %32 : vector<8x8x1xf32> to vector<8x8x8xf32>
    %34 = arith.mulf %29, %33 : vector<8x8x8xf32>
    %35 = arith.mulf %34, %20 : vector<8x8x8xf32>
    "tpu.trace_start"() <{level = 10 : i32, message = "bmn,bne->bme"}> : () -> ()
    %cst_13 = arith.constant dense<0.000000e+00> : vector<8x8x128xf32>
    %36 = tpu.matmul %35, %11, %cst_13 {dimension_numbers = #tpu.dot_dimension_numbers<[2], [1], [1], [2], [0, 0, 0, 1, 1, 2], [0], [0]>} : vector<8x8x8xf32>, vector<8x8x128xf32>, vector<8x8x128xf32> -> vector<8x8x128xf32>
    "tpu.trace_stop"() : () -> ()
    %37 = vector.shape_cast %36 : vector<8x8x128xf32> to vector<64x128xf32>
    %c0_14 = arith.constant 0 : index
    %c0_15 = arith.constant 0 : index
    %38 = vector.load %arg7[%c0_14, %c0_15] : memref<128x128xf32, #tpu.memory_space<vmem>>, vector<128x128xf32>
    %cst_16 = arith.constant dense<0.000000e+00> : vector<64x128xf32>
    %39 = tpu.matmul %37, %38, %cst_16 {dimension_numbers = #tpu.dot_dimension_numbers<[1], [1], [0], [0], [0, 0, 1, 0], [], []>} : vector<64x128xf32>, vector<128x128xf32>, vector<64x128xf32> -> vector<64x128xf32>
    %40 = vector.shape_cast %39 : vector<64x128xf32> to vector<8x8x128xf32>
    %41 = tpu.iota {dimensions = array<i32: 2>} : vector<8x8x128xi32>
    %c0_17 = arith.constant 0 : index
    %c0_18 = arith.constant 0 : index
    %c0_19 = arith.constant 0 : index
    %42 = vector.load %arg4[%c0_17, %c0_18, %c0_19] : memref<8x8x1xi32, #tpu.memory_space<vmem>>, vector<8x8x1xi32>
    %c1_i32 = arith.constant 1 : i32
    %43 = vector.broadcast %c1_i32 : i32 to vector<8x8x1xi32>
    %44 = arith.subi %42, %43 : vector<8x8x1xi32>
    %45 = vector.broadcast %44 : vector<8x8x1xi32> to vector<8x8x128xi32>
    %46 = arith.cmpi eq, %41, %45 : vector<8x8x128xi32>
    %47 = arith.extui %46 : vector<8x8x128xi1> to vector<8x8x128xi32>
    %48 = arith.sitofp %47 : vector<8x8x128xi32> to vector<8x8x128xf32>
    %49 = vector.shape_cast %48 : vector<8x8x128xf32> to vector<64x128xf32>
    %c0_20 = arith.constant 0 : index
    %c0_21 = arith.constant 0 : index
    %50 = vector.load %arg8[%c0_20, %c0_21] : memref<128x128xf32, #tpu.memory_space<vmem>>, vector<128x128xf32>
    %cst_22 = arith.constant dense<0.000000e+00> : vector<64x128xf32>
    %51 = tpu.matmul %49, %50, %cst_22 {dimension_numbers = #tpu.dot_dimension_numbers<[1], [0], [0], [1], [0, 0, 1, 1], [], []>} : vector<64x128xf32>, vector<128x128xf32>, vector<64x128xf32> -> vector<64x128xf32>
    %52 = vector.shape_cast %51 : vector<64x128xf32> to vector<8x8x128xf32>
    %c0_23 = arith.constant 0 : index
    %c0_24 = arith.constant 0 : index
    %c0_25 = arith.constant 0 : index
    %53 = vector.load %arg5[%c0_23, %c0_24, %c0_25] : memref<8x8x1xf32, #tpu.memory_space<vmem>>, vector<8x8x1xf32>
    %54 = vector.broadcast %53 : vector<8x8x1xf32> to vector<8x8x128xf32>
    %55 = arith.addf %52, %54 : vector<8x8x128xf32>
    %56 = tpu.iota {dimensions = array<i32: 1>} : vector<8x8x1xi32>
    %57 = vector.broadcast %0 : vector<8x1x1xi32> to vector<8x8x1xi32>
    %58 = arith.cmpi slt, %56, %57 : vector<8x8x1xi32>
    %59 = arith.extui %58 : vector<8x8x1xi1> to vector<8x8x1xi32>
    %60 = arith.sitofp %59 : vector<8x8x1xi32> to vector<8x8x1xf32>
    %c0_26 = arith.constant 0 : index
    %c0_27 = arith.constant 0 : index
    %c0_28 = arith.constant 0 : index
    %61 = vector.load %arg9[%c0_26, %c0_27, %c0_28] : memref<1x8x1xf32, #tpu.memory_space<vmem>>, vector<1x8x1xf32>
    %62 = vector.broadcast %61 : vector<1x8x1xf32> to vector<8x8x1xf32>
    %63 = arith.mulf %60, %62 : vector<8x8x1xf32>
    %64 = arith.mulf %40, %55 : vector<8x8x128xf32>
    %65 = vector.broadcast %63 : vector<8x8x1xf32> to vector<8x8x128xf32>
    %66 = arith.mulf %64, %65 : vector<8x8x128xf32>
    %cst_29 = arith.constant dense<0.000000e+00> : vector<8x128xf32>
    %67 = vector.multi_reduction <add>, %66, %cst_29 [1] : vector<8x8x128xf32> to vector<8x128xf32>
    %c0_30 = arith.constant 0 : index
    %c0_31 = arith.constant 0 : index
    %68 = vector.load %arg10[%c0_30, %c0_31] : memref<8x128xf32, #tpu.memory_space<vmem>>, vector<8x128xf32>
    tpu.vector_store %arg10[%c0_30, %c0_31], %67 {strides = array<i32>} : memref<8x128xf32, #tpu.memory_space<vmem>>, vector<8x128xf32>,
    return
  }
  func.func @transform_0(%arg0: i32) -> (i32, i32, i32) {
    %c0_i32 = arith.constant 0 : i32
    %c0_i32_0 = arith.constant 0 : i32
    %c0_i32_1 = arith.constant 0 : i32
    return %arg0, %c0_i32, %c0_i32_0 : i32, i32, i32
  }
  func.func @transform_1(%arg0: i32) -> (i32, i32, i32) {
    %c0_i32 = arith.constant 0 : i32
    %c0_i32_0 = arith.constant 0 : i32
    %c0_i32_1 = arith.constant 0 : i32
    return %arg0, %c0_i32, %c0_i32_0 : i32, i32, i32
  }
  func.func @transform_2(%arg0: i32) -> (i32, i32, i32) {
    %c0_i32 = arith.constant 0 : i32
    %c0_i32_0 = arith.constant 0 : i32
    %c0_i32_1 = arith.constant 0 : i32
    return %arg0, %c0_i32, %c0_i32_0 : i32, i32, i32
  }
  func.func @transform_3(%arg0: i32) -> (i32, i32, i32) {
    %c0_i32 = arith.constant 0 : i32
    %c0_i32_0 = arith.constant 0 : i32
    %c0_i32_1 = arith.constant 0 : i32
    return %arg0, %c0_i32, %c0_i32_0 : i32, i32, i32
  }
  func.func @transform_4(%arg0: i32) -> (i32, i32, i32) {
    %c0_i32 = arith.constant 0 : i32
    %c0_i32_0 = arith.constant 0 : i32
    %c0_i32_1 = arith.constant 0 : i32
    return %arg0, %c0_i32, %c0_i32_0 : i32, i32, i32
  }
  func.func @transform_5(%arg0: i32) -> (i32, i32) {
    %c0_i32 = arith.constant 0 : i32
    %c0_i32_0 = arith.constant 0 : i32
    %c0_i32_1 = arith.constant 0 : i32
    return %c0_i32, %c0_i32_0 : i32, i32
  }
  func.func @transform_6(%arg0: i32) -> (i32, i32) {
    %c0_i32 = arith.constant 0 : i32
    %c0_i32_0 = arith.constant 0 : i32
    %c0_i32_1 = arith.constant 0 : i32
    return %c0_i32, %c0_i32_0 : i32, i32
  }
  func.func @transform_7(%arg0: i32) -> (i32, i32) {
    %c0_i32 = arith.constant 0 : i32
    %c0_i32_0 = arith.constant 0 : i32
    %c0_i32_1 = arith.constant 0 : i32
    return %c0_i32, %c0_i32_0 : i32, i32
  }
  func.func @transform_8(%arg0: i32) -> (i32, i32, i32) {
    %c0_i32 = arith.constant 0 : i32
    %c0_i32_0 = arith.constant 0 : i32
    %c0_i32_1 = arith.constant 0 : i32
    %c0_i32_2 = arith.constant 0 : i32
    return %c0_i32, %c0_i32_0, %c0_i32_1 : i32, i32, i32
  }
  func.func @transform_9(%arg0: i32) -> (i32, i32) {
    %c0_i32 = arith.constant 0 : i32
    %c0_i32_0 = arith.constant 0 : i32
    return %arg0, %c0_i32 : i32, i32
  }
}

</mosaic_0001>

<bundles_post_ra>
// kernel: model_forward.1
= control target key start
LH: loop header
LB: loop body
LE: loop exit
PB: predicated region body
PF: predicated region fallthrough
CT: control target
= control target key end

     0   :  { %v2635_v3 = vmov 0.0   ;;  %vm2636_vm0 = vmmov 0   ;;  %v2637_v61 = vmov 0   ;;  %vm998_vm10 = vcmask 64512   ;;  %s3309_s5 = inlined_call_operand.vmem [shape: f32[128,384], index: 5, kind: input, shape index: {}]   ;;  %s3310_s1 = inlined_call_operand.vmem [shape: bf16[8,8,128], index: 1, kind: input, shape index: {}]   ;;  %s3311_s0 = inlined_call_operand.vmem [shape: s32[8,1,1], index: 0, kind: input, shape index: {}]   ;;  %s3312_s2 = inlined_call_operand.vmem [shape: f32[8,8,8], index: 2, kind: input, shape index: {}]   ;;  %s3313_s3 = inlined_call_operand.vmem [shape: s32[8,8,1], index: 3, kind: input, shape index: {}]   ;;  %s3314_s4 = inlined_call_operand.vmem [shape: f32[8,8,1], index: 4, kind: input, shape index: {}]   ;;  %s3315_s8 = inlined_call_operand.vmem [shape: f32[1,8,1], index: 8, kind: input, shape index: {}]   ;;  %s3316_s6 = inlined_call_operand.vmem [shape: f32[128,128], index: 6, kind: input, shape index: {}]   ;;  %s3317_s7 = inlined_call_operand.vmem [shape: f32[128,128], index: 7, kind: input, shape index: {}]   ;;  %s3318_s9 = inlined_call_operand.vmem [shape: f32[8,128], index: 9, kind: output, shape index: {}]  }
   0x1   :  { %v102_v0 = vld [vmem:[%s3309_s5 + $0x170] sm:$0xff]  ;;  %v101_v1 = vld [vmem:[%s3309_s5 + $0x168] sm:$0xff]  ;;  %v99_v2 = vld [vmem:[%s3309_s5 + $0x158] sm:$0xff]  ;;  %168 = vmatprep.mubr.f32.mxu0 %v2635_v3  ;;  %2601 = vset.pattern.permute.xlu0 %v2637_v61 }
   0x2   :  { %104 = vmatprep.subr.mxu0 %v102_v0  ;;  %v98_v4 = vld [vmem:[%s3309_s5 + $0x150] sm:$0xff]  ;;  %v96_v5 = vld [vmem:[%s3309_s5 + $0x140] sm:$0xff]  ;;  %v95_v6 = vld [vmem:[%s3309_s5 + $0x138] sm:$0xff]  ;;  %2602 = vset.pattern.permute.xlu1 %v2637_v61 }
   0x3   :  { %105 = vmatpush1.msra.mxu0 %v101_v1  ;;  %v93_v7 = vld [vmem:[%s3309_s5 + $0x128] sm:$0xff]  ;;  %v92_v8 = vld [vmem:[%s3309_s5 + $0x120] sm:$0xff]  ;;  %v90_v9 = vld [vmem:[%s3309_s5 + $0x110] sm:$0xff] }
   0x4   :  { %106 = vmatprep.subr.mxu0 %v99_v2  ;;  %v89_v10 = vld [vmem:[%s3309_s5 + $0x108] sm:$0xff]  ;;  %v87_v11 = vld [vmem:[%s3309_s5 + $0xf8] sm:$0xff]  ;;  %v86_v12 = vld [vmem:[%s3309_s5 + $0xf0] sm:$0xff] }
   0x5   :  { %107 = vmatpush1.msra.mxu0 %v98_v4  ;;  %v84_v13 = vld [vmem:[%s3309_s5 + $0xe0] sm:$0xff]  ;;  %v83_v14 = vld [vmem:[%s3309_s5 + $0xd8] sm:$0xff]  ;;  %v81_v15 = vld [vmem:[%s3309_s5 + $0xc8] sm:$0xff] }
   0x6   :  { %108 = vmatprep.subr.mxu0 %v96_v5  ;;  %v103_v16 = vld [vmem:[%s3309_s5 + $0x178] sm:$0xff]  ;;  %v100_v17 = vld [vmem:[%s3309_s5 + $0x160] sm:$0xff]  ;;  %v78_v19 = vld [vmem:[%s3309_s5 + $0xb0] sm:$0xff] }
   0x7   :  { %109 = vmatpush1.msra.mxu0 %v95_v6  ;;  %v80_v18 = vld [vmem:[%s3309_s5 + $0xc0] sm:$0xff]  ;;  %2385 = vmatprep.subr.mxu1 %v103_v16  ;;  %v97_v20 = vld [vmem:[%s3309_s5 + $0x148] sm:$0xff]  ;;  %v75_v22 = vld [vmem:[%s3309_s5 + $0x98] sm:$0xff] }
   0x8   :  { %110 = vmatprep.subr.mxu0 %v93_v7  ;;  %2386 = vmatpush3.msra.mxu1 %v103_v16  ;;  %v77_v21 = vld [vmem:[%s3309_s5 + $0xa8] sm:$0xff]  ;;  %v94_v23 = vld [vmem:[%s3309_s5 + $0x130] sm:$0xff]  ;;  %v72_v25 = vld [vmem:[%s3309_s5 + $0x80] sm:$0xff] }
   0x9   :  { %111 = vmatpush1.msra.mxu0 %v92_v8  ;;  %2387 = vmatprep.subr.mxu1 %v100_v17  ;;  %v74_v24 = vld [vmem:[%s3309_s5 + $0x90] sm:$0xff]  ;;  %v91_v26 = vld [vmem:[%s3309_s5 + $0x118] sm:$0xff]  ;;  %v69_v28 = vld [vmem:[%s3309_s5 + $0x68] sm:$0xff] }
   0xa   :  { %112 = vmatprep.subr.mxu0 %v90_v9  ;;  %2388 = vmatpush3.msra.mxu1 %v100_v17  ;;  %v71_v27 = vld [vmem:[%s3309_s5 + $0x78] sm:$0xff]  ;;  %v88_v29 = vld [vmem:[%s3309_s5 + $0x100] sm:$0xff]  ;;  %v66_v31 = vld [vmem:[%s3309_s5 + $0x50] sm:$0xff] }
   0xb   :  { %113 = vmatpush1.msra.mxu0 %v89_v10  ;;  %2389 = vmatprep.subr.mxu1 %v97_v20  ;;  %v68_v30 = vld [vmem:[%s3309_s5 + $0x60] sm:$0xff]  ;;  %v85_v32 = vld [vmem:[%s3309_s5 + $0xe8] sm:$0xff]  ;;  %v63_v34 = vld [vmem:[%s3309_s5 + $0x38] sm:$0xff] }
   0xc   :  { %114 = vmatprep.subr.mxu0 %v87_v11  ;;  %2390 = vmatpush3.msra.mxu1 %v97_v20  ;;  %v65_v33 = vld [vmem:[%s3309_s5 + $0x48] sm:$0xff]  ;;  %v82_v35 = vld [vmem:[%s3309_s5 + $0xd0] sm:$0xff]  ;;  %v60_v37 = vld [vmem:[%s3309_s5 + $0x20] sm:$0xff] }
   0xd   :  { %115 = vmatpush1.msra.mxu0 %v86_v12  ;;  %2391 = vmatprep.subr.mxu1 %v94_v23  ;;  %v62_v36 = vld [vmem:[%s3309_s5 + $0x30] sm:$0xff]  ;;  %v2263_v38 = vld [vmem:[%s3310_s1] sm:$0xff]   ;;  %v79_v39 = vld [vmem:[%s3309_s5 + $0xb8] sm:$0xff] }
   0xe   :  { %116 = vmatprep.subr.mxu0 %v84_v13  ;;  %2392 = vmatpush3.msra.mxu1 %v94_v23  ;;  %v59_v40 = vld [vmem:[%s3309_s5 + $0x18] sm:$0xff]  ;;  %v57_v41 = vld [vmem:[%s3309_s5 + $0x8] sm:$0xff]  ;;  %v76_v42 = vld [vmem:[%s3309_s5 + $0xa0] sm:$0xff]  ;;  %v2264_v44 = vunpack.c.l.bf16 %v2263_v38  ;;  %v2265_v47 = vunpack.c.h.bf16 %v2263_v38 }
   0xf   :  { %117 = vmatpush1.msra.mxu0 %v83_v14  ;;  %2393 = vmatprep.subr.mxu1 %v91_v26  ;;  %v56_v43 = vld [vmem:[%s3309_s5] sm:$0xff]  ;;  %v73_v45 = vld [vmem:[%s3309_s5 + $0x88] sm:$0xff]  ;;  %v70_v46 = vld [vmem:[%s3309_s5 + $0x70] sm:$0xff] }
  0x10   :  { %118 = vmatprep.subr.mxu0 %v81_v15  ;;  %2394 = vmatpush3.msra.mxu1 %v91_v26  ;;  %v2278_v48 = vld [vmem:[%s3310_s1 + $0x8] sm:$0xff]   ;;  %v67_v49 = vld [vmem:[%s3309_s5 + $0x58] sm:$0xff]  ;;  %v64_v50 = vld [vmem:[%s3309_s5 + $0x40] sm:$0xff] }
  0x11   :  { %119 = vmatpush1.msra.mxu0 %v80_v18  ;;  %2395 = vmatprep.subr.mxu1 %v88_v29  ;;  %v2268_v51 = vunpack.c.l.bf16 %v2278_v48  ;;  %v61_v52 = vld [vmem:[%s3309_s5 + $0x28] sm:$0xff]  ;;  %v58_v53 = vld [vmem:[%s3309_s5 + $0x10] sm:$0xff]  ;;  %v2269_v54 = vunpack.c.h.bf16 %v2278_v48  ;;  %v2280_v58 = vld [vmem:[%s3310_s1 + $0x18] sm:$0xff]  }
  0x12   :  { %120 = vmatprep.subr.mxu0 %v78_v19  ;;  %2396 = vmatpush3.msra.mxu1 %v88_v29  ;;  %v2279_v55 = vld [vmem:[%s3310_s1 + $0x10] sm:$0xff]   ;;  %v2276_v59 = vunpack.c.l.bf16 %v2280_v58  ;;  %v2277_v60 = vunpack.c.h.bf16 %v2280_v58  ;;  %v2862_v62 = vld [vmem:[%s3311_s0] ss:$0 sm:$0xff]  ;;  %v2868_v63 = vld [vmem:[%s3311_s0 + $0x2] ss:$0 sm:$0xff]  ;;  %v322_v29 = vlaneseq }
  0x13   :  { %121 = vmatpush1.msra.mxu0 %v77_v21  ;;  %2397 = vmatprep.subr.mxu1 %v85_v32  ;;  %v2272_v56 = vunpack.c.l.bf16 %v2279_v55  ;;  %v2273_v57 = vunpack.c.h.bf16 %v2279_v55  ;;  %v2873_v0 = vld [vmem:[%s3311_s0 + $0x1] ss:$0 sm:$0xff]  ;;  %v2879_v1 = vld [vmem:[%s3311_s0 + $0x3] ss:$0 sm:$0xff]  ;;  %v2886_v2 = vld [vmem:[%s3311_s0 + $0x4] ss:$0 sm:$0xff] }
  0x14   :  { %122 = vmatprep.subr.mxu0 %v75_v22  ;;  %2398 = vmatpush3.msra.mxu1 %v85_v32  ;;  %v2891_v4 = vld [vmem:[%s3311_s0 + $0x5] ss:$0 sm:$0xff]  ;;  %v2898_v5 = vld [vmem:[%s3311_s0 + $0x6] ss:$0 sm:$0xff]  ;;  %v2903_v6 = vld [vmem:[%s3311_s0 + $0x7] ss:$0 sm:$0xff] }
  0x15   :  { %123 = vmatpush1.msra.mxu0 %v74_v24  ;;  %2399 = vmatprep.subr.mxu1 %v82_v35  ;;  %v424_v48 = vld [vmem:[%s3312_s2 + $0x10] sm:$0xff] }
  0x16   :  { %124 = vmatprep.subr.mxu0 %v72_v25  ;;  %2400 = vmatpush3.msra.mxu1 %v82_v35 }
  0x17   :  { %125 = vmatpush1.msra.mxu0 %v71_v27  ;;  %2401 = vmatprep.subr.mxu1 %v79_v39 }
  0x18   :  { %126 = vmatprep.subr.mxu0 %v69_v28  ;;  %2402 = vmatpush3.msra.mxu1 %v79_v39 }
  0x19   :  { %127 = vmatpush1.msra.mxu0 %v68_v30  ;;  %2403 = vmatprep.subr.mxu1 %v76_v42  ;;  %v2941_v30 = vshrl.u32 %v322_v29, 7 }
  0x1a   :  { %128 = vmatprep.subr.mxu0 %v66_v31  ;;  %2404 = vmatpush3.msra.mxu1 %v76_v42  ;;  %v2943_v31 = vand.u32 127, %v322_v29 }
  0x1b   :  { %129 = vmatpush1.msra.mxu0 %v65_v33  ;;  %2405 = vmatprep.subr.mxu1 %v73_v45 }
  0x1c   :  { %130 = vmatprep.subr.mxu0 %v63_v34  ;;  %2406 = vmatpush3.msra.mxu1 %v73_v45 }
  0x1d   :  { %131 = vmatpush1.msra.mxu0 %v62_v36  ;;  %2407 = vmatprep.subr.mxu1 %v70_v46 }
  0x1e   :  { %132 = vmatprep.subr.mxu0 %v60_v37  ;;  %2417 = vmatprep.mubr.f32.mxu1 %v2264_v44  ;;  %v422_v37 = vld [vmem:[%s3312_s2] sm:$0xff] }
  0x1f   :  { %133 = vmatpush1.msra.mxu0 %v59_v40  ;;  %2408 = vmatpush3.msra.mxu1 %v70_v46 }
  0x20   :  { %134 = vmatprep.subr.mxu0 %v57_v41  ;;  %2409 = vmatprep.subr.mxu1 %v67_v49  ;;  %v423_v41 = vld [vmem:[%s3312_s2 + $0x8] sm:$0xff] }
  0x21   :  { %135 = vmatpush1.msra.mxu0 %v56_v43  ;;  %2410 = vmatpush3.msra.mxu1 %v67_v49 }
  0x22   :  { %169 = vmatmul.mubr.f32.vlgmr.msra.gmra.mxu0 %v2264_v44  ;;  %2489 = vmatprep.subr.mxu0 %v2635_v3 }
  0x23   :  { %174 = vmatprep.mubr.f32.mxu0 %v2635_v3  ;;  %2411 = vmatprep.subr.mxu1 %v64_v50 }
  0x24   :  { %2412 = vmatpush3.msra.mxu1 %v64_v50  ;;  %359 = vperm.xlu0 %2601, %v2862_v62  }
  0x25   :  { %2413 = vmatprep.subr.mxu1 %v61_v52  ;;  %365 = vperm.xlu1 %2602, %v2868_v63  }
  0x26   :  { %175 = vmatmul.mubr.f32.gmra.mxu0 %v2265_v47  ;;  %2414 = vmatpush3.msra.mxu1 %v61_v52 }
  0x27   :  { %180 = vmatprep.mubr.f32.mxu0 %v2635_v3  ;;  %2415 = vmatprep.subr.mxu1 %v58_v53 }
  0x28   :  { %2416 = vmatpush3.msra.mxu1 %v58_v53  ;;  %362 = vperm.xlu0 %2601, %v2873_v0  }
  0x29   :  { %2418 = vmatmul.mubr.f32.vlgmr.msra.gmra.mxu1 %v2265_v47  ;;  %2429 = vmatprep.subr.mxu1 %v2635_v3 }
  0x2a   :  { %181 = vmatmul.mubr.f32.gmra.mxu0 %v2268_v51  ;;  %2420 = vmatprep.mubr.f32.mxu1 %v2268_v51 }
  0x2b   :  { %186 = vmatprep.mubr.f32.mxu0 %v2635_v3  ;;  %368 = vperm.xlu1 %2602, %v2879_v1  }
  0x2c   :  { %371 = vperm.xlu0 %2601, %v2886_v2  }
  0x2d   :  { %2421 = vmatmul.mubr.f32.gmra.mxu1 %v2269_v54 }
  0x2e   :  { %187 = vmatmul.mubr.f32.gmra.mxu0 %v2269_v54  ;;  %2423 = vmatprep.mubr.f32.mxu1 %v2272_v56 }
  0x2f   :  { %192 = vmatprep.mubr.f32.mxu0 %v2635_v3  ;;  %374 = vperm.xlu1 %2602, %v2891_v4  }
  0x30   :  { %377 = vperm.xlu0 %2601, %v2898_v5  }
  0x31   :  { %2424 = vmatmul.mubr.f32.gmra.mxu1 %v2273_v57 }
  0x32   :  { %193 = vmatmul.mubr.f32.gmra.mxu0 %v2272_v56  ;;  %2426 = vmatprep.mubr.f32.mxu1 %v2276_v59  ;;  %v425_v56 = vld [vmem:[%s3312_s2 + $0x18] sm:$0xff] }
  0x33   :  { %198 = vmatprep.mubr.f32.mxu0 %v2635_v3  ;;  %380 = vperm.xlu1 %2602, %v2903_v6  }
  0x35   :  { %2427 = vmatmul.mubr.f32.gmra.mxu1 %v2277_v60 }
  0x36   :  { %199 = vmatmul.mubr.f32.gmra.mxu0 %v2273_v57  ;;  %2431 = vmatprep.mubr.msk.f32.mxu1 %vm2636_vm0, %v2635_v3 }
  0x37   :  { %204 = vmatprep.mubr.f32.mxu0 %v2635_v3 }
  0x3a   :  { %205 = vmatmul.mubr.f32.gmra.mxu0 %v2276_v59 }
  0x3b   :  { %210 = vmatprep.mubr.f32.mxu0 %v2635_v3 }
  0x3e   :  { %211 = vmatmul.mubr.f32.gmra.mxu0 %v2277_v60 }
  0x3f   :  { %2491 = vmatprep.mubr.msk.f32.mxu0 %vm2636_vm0, %v2635_v3 }
  0x9f   :  { %v360_v32 = vpop.permute.xlu0 %359 }
  0xa0   :  { %vm382_vm1 = vcmp.lt.s32.totalorder %v2941_v30, %v360_v32  ;;  %vm390_vm2 = vcmp.lt.s32.totalorder %v2943_v31, %v360_v32  ;;  %v366_v34 = vpop.permute.xlu1 %365 }
  0xa1   :  { %vm398_vm3 = vmand %vm382_vm1, %vm390_vm2  ;;  %vm384_vm7 = vcmp.lt.s32.totalorder %v2941_v30, %v366_v34  ;;  %vm392_vm8 = vcmp.lt.s32.totalorder %v2943_v31, %v366_v34 }
  0xa2   :  { %v2952_v36 = vsel %vm398_vm3, 1.0, %v2635_v3  ;;  %vm400_vm9 = vmand %vm384_vm7, %vm392_vm8 }
  0xa3   :  { %v363_v33 = vpop.permute.xlu0 %362  ;;  %v430_v38 = vmul.f32 %v2952_v36, %v422_v37  ;;  %v2974_v47 = vsel %vm400_vm9, 1.0, %v2635_v3 }
  0xa4   :  { %vm383_vm4 = vcmp.lt.s32.totalorder %v2941_v30, %v363_v33  ;;  %vm391_vm5 = vcmp.lt.s32.totalorder %v2943_v31, %v363_v33  ;;  %v432_v52 = vmul.f32 %v2974_v47, %v424_v48  ;;  %v428_v33 = vld [vmem:[%s3312_s2 + $0x30] sm:$0xff] }
  0xa5   :  { %vm399_vm6 = vmand %vm383_vm4, %vm391_vm5 }
  0xa6   :  { %v2963_v40 = vsel %vm399_vm6, 1.0, %v2635_v3  ;;  %v369_v42 = vpop.permute.xlu1 %368 }
  0xa7   :  { %vm385_vm11 = vcmp.lt.s32.totalorder %v2941_v30, %v369_v42  ;;  %vm393_vm12 = vcmp.lt.s32.totalorder %v2943_v31, %v369_v42  ;;  %v431_v45 = vmul.f32 %v2963_v40, %v423_v41  ;;  %v372_v53 = vpop.permute.xlu0 %371 }
  0xa8   :  { %vm401_vm13 = vmand %vm385_vm11, %vm393_vm12  ;;  %vm386_vm14 = vcmp.lt.s32.totalorder %v2941_v30, %v372_v53  ;;  %vm394_vm15 = vcmp.lt.s32.totalorder %v2943_v31, %v372_v53  ;;  %vm2042_vm12 = vcmp.lt.s32.totalorder %v2941_v30, %v2873_v0 }
  0xa9   :  { %v2987_v55 = vsel %vm401_vm13, 1.0, %v2635_v3  ;;  %vm402_vm1 = vmand %vm386_vm14, %vm394_vm15  ;;  %vm2041_vm13 = vcmp.lt.s32.totalorder %v2941_v30, %v2862_v62  ;;  %vm2043_vm14 = vcmp.lt.s32.totalorder %v2941_v30, %v2868_v63  ;;  %v1989_v62 = vld [vmem:[%s3314_s4 + $0x20] sm:$0xff]  ;;  %vm2044_vm15 = vcmp.lt.s32.totalorder %v2941_v30, %v2879_v1  ;;  %v1991_v63 = vld [vmem:[%s3314_s4 + $0x30] sm:$0xff] }
  0xaa   :  { %v433_v60 = vmul.f32 %v2987_v55, %v425_v56  ;;  %v375_v61 = vpop.permute.xlu1 %374  ;;  %v2254_v0 = vsel %vm2041_vm13, 1.0, %v2635_v3  ;;  %vm2188_vm13 = vcmask 1042434  }
  0xab   :  { %vm387_vm2 = vcmp.lt.s32.totalorder %v2941_v30, %v375_v61  ;;  %vm395_vm3 = vcmp.lt.s32.totalorder %v2943_v31, %v375_v61 }
  0xac   :  { %vm403_vm4 = vmand %vm387_vm2, %vm395_vm3  ;;  %vm2045_vm2 = vcmp.lt.s32.totalorder %v2941_v30, %v2886_v2  ;;  %vm2048_vm3 = vcmp.lt.s32.totalorder %v2941_v30, %v2903_v6 }
  0xad   :  { %v2258_v1 = vsel %vm2045_vm2, 1.0, %v2635_v3  ;;  %v2261_v2 = vsel %vm2048_vm3, 1.0, %v2635_v3  ;;  %vm2196_vm2 = vcmask 1046534   ;;  %vm2198_vm3 = vcmask 1047559  }
  0xe2   :  { %v170_v7 = vpop.f32.mrf.mxu0 }
  0xe4   :  { %v172_v8 = vpop.f32.mrf.mxu0 }
  0xe5   :  { %2430 = vmatpush3.xpose.msra.mxu1 %v172_v8 }
  0xe6   :  { %v176_v9 = vpop.f32.mrf.mxu0  ;;  %2434 = vmatprep.subr.mxu1 %v2635_v3 }
  0xe8   :  { %v178_v10 = vpop.f32.mrf.mxu0  ;;  %2432 = vmatmul.mubr.f32.vlgmr.msra.gmra.mxu1 %v170_v7 }
  0xe9   :  { %2435 = vmatpush3.xpose.msra.mxu1 %v178_v10  ;;  %2436 = vmatprep.mubr.msk.f32.mxu1 %vm2636_vm0, %v2635_v3  ;;  %v2914_v14 = vpop.f32.mrf.mxu1 }
  0xea   :  { %v182_v11 = vpop.f32.mrf.mxu0  ;;  %2439 = vmatprep.subr.mxu1 %v2635_v3 }
  0xeb   :  { %v283_v16 = vpop.f32.mrf.mxu1 }
  0xec   :  { %v184_v12 = vpop.f32.mrf.mxu0  ;;  %2437 = vmatmul.mubr.f32.vlgmr.msra.gmra.mxu1 %v176_v9  ;;  %v378_v9 = vpop.permute.xlu0 %377 }
  0xed   :  { %2440 = vmatpush3.xpose.msra.mxu1 %v184_v12  ;;  %2441 = vmatprep.mubr.msk.f32.mxu1 %vm2636_vm0, %v2635_v3  ;;  %v2919_v18 = vpop.f32.mrf.mxu1  ;;  %v426_v12 = vld [vmem:[%s3312_s2 + $0x20] sm:$0xff]  ;;  %vm388_vm5 = vcmp.lt.s32.totalorder %v2941_v30, %v378_v9  ;;  %vm396_vm6 = vcmp.lt.s32.totalorder %v2943_v31, %v378_v9 }
  0xee   :  { %v188_v13 = vpop.f32.mrf.mxu0  ;;  %2444 = vmatprep.subr.mxu1 %v2635_v3  ;;  %vm404_vm7 = vmand %vm388_vm5, %vm396_vm6 }
  0xef   :  { %v2921_v20 = vpop.f32.mrf.mxu1  ;;  %v3022_v32 = vsel %vm404_vm7, 1.0, %v2635_v3 }
  0xf0   :  { %v190_v15 = vpop.f32.mrf.mxu0  ;;  %2442 = vmatmul.mubr.f32.vlgmr.msra.gmra.mxu1 %v182_v11  ;;  %v3002_v11 = vsel %vm402_vm1, 1.0, %v2635_v3  ;;  %vm2046_vm1 = vcmp.lt.s32.totalorder %v2941_v30, %v2891_v4  ;;  %v1992_v4 = vld [vmem:[%s3314_s4 + $0x38] sm:$0xff] }
  0xf1   :  { %2445 = vmatpush3.xpose.msra.mxu1 %v190_v15  ;;  %2446 = vmatprep.mubr.msk.f32.mxu1 %vm2636_vm0, %v2635_v3  ;;  %v2926_v22 = vpop.f32.mrf.mxu1 }
  0xf2   :  { %v194_v17 = vpop.f32.mrf.mxu0  ;;  %2449 = vmatprep.subr.mxu1 %v2635_v3 }
  0xf3   :  { %v303_v24 = vpop.f32.mrf.mxu1 }
  0xf4   :  { %v196_v19 = vpop.f32.mrf.mxu0  ;;  %2447 = vmatmul.mubr.f32.vlgmr.msra.gmra.mxu1 %v188_v13  ;;  %2490 = vmatpush3.msra.mxu0 %v303_v24  ;;  %v427_v24 = vld [vmem:[%s3312_s2 + $0x28] sm:$0xff] }
  0xf5   :  { %2450 = vmatpush3.xpose.msra.mxu1 %v196_v19  ;;  %2451 = vmatprep.mubr.msk.f32.mxu1 %vm2636_vm0, %v2635_v3  ;;  %v2949_v35 = vpop.f32.mrf.mxu1  ;;  %v381_v19 = vpop.permute.xlu1 %380 }
  0xf6   :  { %v200_v21 = vpop.f32.mrf.mxu0  ;;  %2454 = vmatprep.subr.mxu1 %v2635_v3  ;;  %2499 = vmatprep.subr.mxu0 %v2635_v3  ;;  %vm389_vm8 = vcmp.lt.s32.totalorder %v2941_v30, %v381_v19  ;;  %vm397_vm9 = vcmp.lt.s32.totalorder %v2943_v31, %v381_v19 }
  0xf7   :  { %v2960_v39 = vpop.f32.mrf.mxu1  ;;  %vm405_vm11 = vmand %vm389_vm8, %vm397_vm9 }
  0xf8   :  { %v202_v23 = vpop.f32.mrf.mxu0  ;;  %2452 = vmatmul.mubr.f32.vlgmr.msra.gmra.mxu1 %v194_v17 }
  0xf9   :  { %2455 = vmatpush3.xpose.msra.mxu1 %v202_v23  ;;  %2456 = vmatprep.mubr.msk.f32.mxu1 %vm2636_vm0, %v2635_v3  ;;  %v3012_v23 = vsel %vm403_vm4, 1.0, %v2635_v3  ;;  %vm2047_vm4 = vcmp.lt.s32.totalorder %v2941_v30, %v2898_v5 }
  0xfa   :  { %v206_v25 = vpop.f32.mrf.mxu0  ;;  %2459 = vmatprep.subr.mxu1 %v2635_v3 }
  0xfc   :  { %v208_v26 = vpop.f32.mrf.mxu0  ;;  %2457 = vmatmul.mubr.f32.vlgmr.msra.gmra.mxu1 %v200_v21 }
  0xfd   :  { %2460 = vmatpush3.xpose.msra.mxu1 %v208_v26  ;;  %2461 = vmatprep.mubr.msk.f32.mxu1 %vm2636_vm0, %v2635_v3 }
  0xfe   :  { %v212_v27 = vpop.f32.mrf.mxu0  ;;  %2464 = vmatprep.subr.mxu1 %v2635_v3 }
 0x100   :  { %v214_v28 = vpop.f32.mrf.mxu0  ;;  %2462 = vmatmul.mubr.f32.vlgmr.msra.gmra.mxu1 %v206_v25 }
 0x101   :  { %2465 = vmatpush3.xpose.msra.mxu1 %v214_v28  ;;  %2466 = vmatprep.mubr.msk.f32.mxu1 %vm2636_vm0, %v2635_v3 }
 0x102   :  { %2469 = vmatprep.subr.mxu1 %v2635_v3 }
 0x104   :  { %2467 = vmatmul.mubr.f32.vlgmr.msra.gmra.mxu1 %v212_v27  ;;  %v435_v27 = vmul.f32 %v3012_v23, %v427_v24 }
 0x105   :  { %2470 = vmatpush3.msra.mxu1 %v283_v16  ;;  %2471 = vmatprep.mubr.msk.f32.mxu1 %vm2636_vm0, %v2635_v3  ;;  %v434_v16 = vmul.f32 %v3002_v11, %v426_v12 }
 0x106   :  { %2474 = vmatprep.subr.mxu1 %v2635_v3 }
 0x1a8   :  { %v504_v43 = vpop.f32.mrf.mxu1 }
 0x1a9   :  { %v2970_v44 = vadd.f32 %v504_v43, %v430_v38  ;;  %v436_v38 = vmul.f32 %v3022_v32, %v428_v33  ;;  %v3030_v43 = vsel %vm405_vm11, 1.0, %v2635_v3 }
 0x1aa   :  { %v2433_v46 = vpop.f32.mrf.mxu1 }
 0x1ab   :  { %v999_v49 = vsel %vm998_vm10, %v2970_v44, -inf }
 0x1ac   :  { %v574_v50 = vpop.f32.mrf.mxu1  ;;  %1000 = vmax.xlane.f32.xlu0 %v999_v49 }
 0x1ad   :  { %v2981_v51 = vadd.f32 %v574_v50, %v431_v45  ;;  %v429_v45 = vld [vmem:[%s3312_s2 + $0x38] sm:$0xff] }
 0x1ae   :  { %v2438_v54 = vpop.f32.mrf.mxu1  ;;  %v437_v49 = vmul.f32 %v3030_v43, %v429_v45 }
 0x1af   :  { %v1002_v57 = vsel %vm998_vm10, %v2981_v51, -inf }
 0x1b0   :  { %v644_v58 = vpop.f32.mrf.mxu1  ;;  %1003 = vmax.xlane.f32.xlu1 %v1002_v57 }
 0x1b1   :  { %v2994_v59 = vadd.f32 %v644_v58, %v432_v52 }
 0x1b2   :  { %v2443_v7 = vpop.f32.mrf.mxu1 }
 0x1b3   :  { %v1005_v8 = vsel %vm998_vm10, %v2994_v59, -inf }
 0x1b4   :  { %v714_v10 = vpop.f32.mrf.mxu1  ;;  %1006 = vmax.xlane.f32.xlu0 %v1005_v8 }
 0x1b5   :  { %v715_v13 = vadd.f32 %v714_v10, %v433_v60 }
 0x1b6   :  { %v2448_v15 = vpop.f32.mrf.mxu1 }
 0x1b7   :  { %v1008_v17 = vsel %vm998_vm10, %v715_v13, -inf }
 0x1b8   :  { %v784_v21 = vpop.f32.mrf.mxu1  ;;  %1009 = vmax.xlane.f32.xlu0 %v1008_v17 }
 0x1b9   :  { %v785_v25 = vadd.f32 %v784_v21, %v434_v16 }
 0x1ba   :  { %v2453_v26 = vpop.f32.mrf.mxu1 }
 0x1bb   :  { %v1011_v28 = vsel %vm998_vm10, %v785_v25, -inf }
 0x1bc   :  { %v854_v29 = vpop.f32.mrf.mxu1  ;;  %1012 = vmax.xlane.f32.xlu1 %v1011_v28 }
 0x1bd   :  { %v855_v34 = vadd.f32 %v854_v29, %v435_v27 }
 0x1be   :  { %v2458_v37 = vpop.f32.mrf.mxu1 }
 0x1bf   :  { %v1014_v41 = vsel %vm998_vm10, %v855_v34, -inf }
 0x1c0   :  { %v924_v42 = vpop.f32.mrf.mxu1  ;;  %1015 = vmax.xlane.f32.xlu0 %v1014_v41 }
 0x1c1   :  { %v925_v46 = vadd.f32 %v924_v42, %v436_v38 }
 0x1c2   :  { %v2463_v48 = vpop.f32.mrf.mxu1 }
 0x1c3   :  { %v1017_v50 = vsel %vm998_vm10, %v925_v46, -inf }
 0x1c4   :  { %v994_v52 = vpop.f32.mrf.mxu1  ;;  %1018 = vmax.xlane.f32.xlu1 %v1017_v50 }
 0x1c5   :  { %v995_v53 = vadd.f32 %v994_v52, %v437_v49 }
 0x1c6   :  { %v2468_v54 = vpop.f32.mrf.mxu1 }
 0x1c7   :  { %v1020_v56 = vsel %vm998_vm10, %v995_v53, -inf }
 0x1c8   :  { %1021 = vmax.xlane.f32.xlu0 %v1020_v56 }
 0x235   :  { %v1001_v57 = vpop.xlane.xlu0 %1000 }
 0x236   :  { %v1023_v58 = vsub.f32 %v2970_v44, %v1001_v57 }
 0x238   :  { %v1031_v60 = vmul.f32 1.442695, %v1023_v58  ;;  %v1800_v58 = vld [vmem:[%s3313_s3] sm:$0xff] }
 0x239   :  { %v1004_v61 = vpop.xlane.xlu1 %1003 }
 0x23a   :  { %2603 = vpow2.f32 %v1031_v60  ;;  %v1024_v7 = vsub.f32 %v2981_v51, %v1004_v61  ;;  %v2230_v60 = vadd.s32 4294967295, %v1800_v58  ;;  %v1802_v61 = vld [vmem:[%s3313_s3 + $0x10] sm:$0xff] }
 0x23c   :  { %v1033_v8 = vmul.f32 1.442695, %v1024_v7  ;;  %v2232_v7 = vadd.s32 4294967295, %v1802_v61 }
 0x23d   :  { %v1007_v9 = vpop.xlane.xlu0 %1006 }
 0x23e   :  { %2605 = vpow2.f32 %v1033_v8  ;;  %v1025_v10 = vsub.f32 %v2994_v59, %v1007_v9  ;;  %v1803_v8 = vld [vmem:[%s3313_s3 + $0x18] sm:$0xff]  ;;  %v1801_v9 = vld [vmem:[%s3313_s3 + $0x8] sm:$0xff] }
 0x240   :  { %v1035_v12 = vmul.f32 1.442695, %v1025_v10  ;;  %v2233_v10 = vadd.s32 4294967295, %v1803_v8 }
 0x241   :  { %v1010_v15 = vpop.xlane.xlu0 %1009 }
 0x242   :  { %2607 = vpow2.f32 %v1035_v12  ;;  %v1026_v16 = vsub.f32 %v715_v13, %v1010_v15  ;;  %v2231_v12 = vadd.s32 4294967295, %v1801_v9  ;;  %v1805_v15 = vld [vmem:[%s3313_s3 + $0x28] sm:$0xff] }
 0x244   :  { %v1037_v17 = vmul.f32 1.442695, %v1026_v16  ;;  %v1804_v16 = vld [vmem:[%s3313_s3 + $0x20] sm:$0xff] }
 0x245   :  { %v1013_v19 = vpop.xlane.xlu1 %1012 }
 0x246   :  { %2609 = vpow2.f32 %v1037_v17  ;;  %v1027_v21 = vsub.f32 %v785_v25, %v1013_v19  ;;  %v2235_v17 = vadd.s32 4294967295, %v1805_v15  ;;  %v2234_v19 = vadd.s32 4294967295, %v1804_v16 }
 0x247   :  { %v3041_v24 = vpop.eup %2603 }
 0x248   :  { %v1039_v44 = vmul.f32 1.442695, %v1027_v21  ;;  %v1047_v26 = vsel %vm998_vm10, %v3041_v24, 0.0  ;;  %v1807_v21 = vld [vmem:[%s3313_s3 + $0x38] sm:$0xff] }
 0x249   :  { %1048 = vadd.xlane.f32.xlu1 %v1047_v26  ;;  %v1016_v51 = vpop.xlane.xlu0 %1015  ;;  %v2237_v26 = vadd.s32 4294967295, %v1807_v21 }
 0x24a   :  { %2611 = vpow2.f32 %v1039_v44  ;;  %v1028_v27 = vsub.f32 %v855_v34, %v1016_v51  ;;  %v1806_v44 = vld [vmem:[%s3313_s3 + $0x30] sm:$0xff] }
 0x24b   :  { %v3045_v28 = vpop.eup %2605  ;;  %v2236_v51 = vadd.s32 4294967295, %v1806_v44 }
 0x24c   :  { %v1041_v59 = vmul.f32 1.442695, %v1028_v27  ;;  %v1050_v13 = vsel %vm998_vm10, %v3045_v28, 0.0  ;;  %v1986_v27 = vld [vmem:[%s3314_s4 + $0x8] sm:$0xff] }
 0x24d   :  { %1051 = vadd.xlane.f32.xlu0 %v1050_v13  ;;  %v1019_v29 = vpop.xlane.xlu1 %1018  ;;  %v1988_v13 = vld [vmem:[%s3314_s4 + $0x18] sm:$0xff] }
 0x24e   :  { %2613 = vpow2.f32 %v1041_v59  ;;  %v1029_v25 = vsub.f32 %v925_v46, %v1019_v29  ;;  %v1985_v59 = vld [vmem:[%s3314_s4] sm:$0xff]  ;;  %v1987_v29 = vld [vmem:[%s3314_s4 + $0x10] sm:$0xff] }
 0x24f   :  { %v3049_v33 = vpop.eup %2607 }
 0x250   :  { %v1043_v37 = vmul.f32 1.442695, %v1029_v25  ;;  %v1053_v38 = vsel %vm998_vm10, %v3049_v33, 0.0  ;;  %v2065_v25 = vld [vmem:[%s3315_s8] sm:$0xff] }
 0x251   :  { %1054 = vadd.xlane.f32.xlu1 %v1053_v38  ;;  %v1022_v41 = vpop.xlane.xlu0 %1021  ;;  %v1990_v38 = vld [vmem:[%s3314_s4 + $0x28] sm:$0xff]  ;;  %v2070_v58 = vmul.f32 %v2258_v1, %v2065_v25  ;;  %v2073_v61 = vmul.f32 %v2261_v2, %v2065_v25 }
 0x252   :  { %2615 = vpow2.f32 %v1043_v37  ;;  %v1030_v34 = vsub.f32 %v995_v53, %v1022_v41  ;;  %v2255_v37 = vsel %vm2042_vm12, 1.0, %v2635_v3  ;;  %vm2186_vm12 = vcmask 1041409  }
 0x253   :  { %v3053_v42 = vpop.eup %2609  ;;  %v2067_v41 = vmul.f32 %v2255_v37, %v2065_v25  ;;  %v1874_v37 = vld [vmem:[%s3317_s7 + $0x50] sm:$0xff] }
 0x254   :  { %v1045_v45 = vmul.f32 1.442695, %v1030_v34  ;;  %v1056_v48 = vsel %vm998_vm10, %v3053_v42, 0.0  ;;  %v2066_v34 = vmul.f32 %v2254_v0, %v2065_v25  ;;  %v1873_v0 = vld [vmem:[%s3317_s7 + $0x48] sm:$0xff] }
 0x255   :  { %1057 = vadd.xlane.f32.xlu0 %v1056_v48 }
 0x256   :  { %2617 = vpow2.f32 %v1045_v45  ;;  %v2256_v45 = vsel %vm2043_vm14, 1.0, %v2635_v3  ;;  %vm2190_vm14 = vcmask 1043459  }
 0x257   :  { %v3057_v49 = vpop.eup %2611  ;;  %v2068_v48 = vmul.f32 %v2256_v45, %v2065_v25  ;;  %v1870_v45 = vld [vmem:[%s3317_s7 + $0x30] sm:$0xff] }
 0x258   :  { %v1059_v46 = vsel %vm998_vm10, %v3057_v49, 0.0 }
 0x259   :  { %1060 = vadd.xlane.f32.xlu1 %v1059_v46  ;;  %v2257_v46 = vsel %vm2044_vm15, 1.0, %v2635_v3  ;;  %vm2192_vm15 = vcmask 1044484  }
 0x25b   :  { %v3061_v50 = vpop.eup %2613 }
 0x25c   :  { %v1062_v52 = vsel %vm998_vm10, %v3061_v50, 0.0 }
 0x25d   :  { %1063 = vadd.xlane.f32.xlu0 %v1062_v52  ;;  %v2069_v52 = vmul.f32 %v2257_v46, %v2065_v25  ;;  %v1869_v46 = vld [vmem:[%s3317_s7 + $0x28] sm:$0xff] }
 0x25f   :  { %v3065_v53 = vpop.eup %2615 }
 0x260   :  { %v1065_v54 = vsel %vm998_vm10, %v3065_v53, 0.0 }
 0x261   :  { %1066 = vadd.xlane.f32.xlu1 %v1065_v54  ;;  %v2259_v54 = vsel %vm2046_vm1, 1.0, %v2635_v3  ;;  %vm2194_vm1 = vcmask 1045509  }
 0x263   :  { %v3069_v56 = vpop.eup %2617 }
 0x264   :  { %v1068_v57 = vsel %vm998_vm10, %v3069_v56, 0.0 }
 0x265   :  { %1069 = vadd.xlane.f32.xlu0 %v1068_v57  ;;  %v2071_v57 = vmul.f32 %v2259_v54, %v2065_v25  ;;  %v1867_v54 = vld [vmem:[%s3317_s7 + $0x18] sm:$0xff] }
 0x272   :  { %1817 = vperm.xlu1 %2602, %v2230_v60   ;;  %v2260_v60 = vsel %vm2047_vm4, 1.0, %v2635_v3 }
 0x276   :  { %1823 = vperm.xlu1 %2602, %v2232_v7   ;;  %v2072_v7 = vmul.f32 %v2260_v60, %v2065_v25  ;;  %v1875_v25 = vld [vmem:[%s3317_s7 + $0x58] sm:$0xff]  ;;  %v1864_v60 = vld [vmem:[%s3317_s7] sm:$0xff] }
 0x27a   :  { %1826 = vperm.xlu1 %2602, %v2233_v10  }
 0x27b   :  { %1820 = vperm.xlu0 %2601, %v2231_v12  }
 0x27e   :  { %1832 = vperm.xlu1 %2602, %v2235_v17  }
 0x27f   :  { %1829 = vperm.xlu0 %2601, %v2234_v19  }
 0x282   :  { %1838 = vperm.xlu1 %2602, %v2237_v26  }
 0x283   :  { %1835 = vperm.xlu0 %2601, %v2236_v51  }
 0x286   :  { %2000 = vperm.xlu1 %2602, %v1986_v27  }
 0x287   :  { %1995 = vperm.xlu0 %2601, %v1985_v59  }
 0x28a   :  { %2010 = vperm.xlu1 %2602, %v1988_v13  }
 0x28b   :  { %2005 = vperm.xlu0 %2601, %v1987_v29   ;;  %v1691_v29 = vld [vmem:[%s3316_s6 + $0x60] sm:$0xff] }
 0x28e   :  { %2020 = vperm.xlu1 %2602, %v1990_v38   ;;  %v1690_v38 = vld [vmem:[%s3316_s6 + $0x58] sm:$0xff] }
 0x28f   :  { %2015 = vperm.xlu0 %2601, %v1989_v62   ;;  %v1872_v62 = vld [vmem:[%s3317_s7 + $0x40] sm:$0xff] }
 0x292   :  { %2089 = vperm.xlu1 %2602, %v2067_v41   ;;  %v1689_v41 = vld [vmem:[%s3316_s6 + $0x50] sm:$0xff] }
 0x293   :  { %2084 = vperm.xlu0 %2601, %v2066_v34   ;;  %v1871_v34 = vld [vmem:[%s3317_s7 + $0x38] sm:$0xff] }
 0x296   :  { %2094 = vperm.xlu1 %2602, %v2068_v48   ;;  %v1688_v48 = vld [vmem:[%s3316_s6 + $0x48] sm:$0xff] }
 0x297   :  { %2025 = vperm.xlu0 %2601, %v1991_v63   ;;  %v1868_v63 = vld [vmem:[%s3317_s7 + $0x20] sm:$0xff] }
 0x29a   :  { %2099 = vperm.xlu1 %2602, %v2069_v52   ;;  %v1687_v52 = vld [vmem:[%s3316_s6 + $0x40] sm:$0xff] }
 0x29b   :  { %2030 = vperm.xlu0 %2601, %v1992_v4   ;;  %v1866_v4 = vld [vmem:[%s3317_s7 + $0x10] sm:$0xff] }
 0x29e   :  { %2109 = vperm.xlu1 %2602, %v2071_v57   ;;  %v1686_v57 = vld [vmem:[%s3316_s6 + $0x38] sm:$0xff] }
 0x29f   :  { %2104 = vperm.xlu0 %2601, %v2070_v58   ;;  %v1865_v58 = vld [vmem:[%s3317_s7 + $0x8] sm:$0xff] }
 0x2a2   :  { %2119 = vperm.xlu1 %2602, %v2073_v61  }
 0x2a3   :  { %2114 = vperm.xlu0 %2601, %v2072_v7   ;;  %v1685_v7 = vld [vmem:[%s3316_s6 + $0x30] sm:$0xff] }
 0x2d2   :  { %v1049_v6 = vpop.xlane.xlu1 %1048 }
 0x2d3   :  { %2619 = vrcp.f32 %v1049_v6 }
 0x2d6   :  { %v1052_v8 = vpop.xlane.xlu0 %1051 }
 0x2d7   :  { %2621 = vrcp.f32 %v1052_v8  ;;  %v1684_v8 = vld [vmem:[%s3316_s6 + $0x28] sm:$0xff] }
 0x2da   :  { %v1055_v9 = vpop.xlane.xlu1 %1054 }
 0x2db   :  { %2623 = vrcp.f32 %v1055_v9 }
 0x2de   :  { %v1058_v5 = vpop.xlane.xlu0 %1057 }
 0x2df   :  { %2625 = vrcp.f32 %v1058_v5  ;;  %v1683_v5 = vld [vmem:[%s3316_s6 + $0x20] sm:$0xff] }
 0x2e0   :  { %v2620_v30 = vpop.eup %2619 }
 0x2e1   :  { %v1079_v10 = vmul.f32 %v2620_v30, %v3041_v24 }
 0x2e2   :  { %v1061_v12 = vpop.xlane.xlu1 %1060 }
 0x2e3   :  { %2627 = vrcp.f32 %v1061_v12  ;;  %v1087_v15 = vmul.f32 %v2952_v36, %v1079_v10  ;;  %v1682_v12 = vld [vmem:[%s3316_s6 + $0x18] sm:$0xff] }
 0x2e4   :  { %v2622_v16 = vpop.eup %2621 }
 0x2e5   :  { %2472 = vmatmul.mubr.msk.f32.vlgmr.msra.gmra.mxu1 %vm998_vm10, %v1087_v15  ;;  %v1080_v17 = vmul.f32 %v2622_v16, %v3045_v28  ;;  %v1681_v15 = vld [vmem:[%s3316_s6 + $0x10] sm:$0xff]  ;;  %v1680_v16 = vld [vmem:[%s3316_s6 + $0x8] sm:$0xff] }
 0x2e6   :  { %2475 = vmatpush3.msra.mxu1 %v2914_v14  ;;  %v1064_v19 = vpop.xlane.xlu0 %1063  ;;  %2476 = vmatprep.mubr.msk.f32.mxu1 %vm2636_vm0, %v2635_v3 }
 0x2e7   :  { %2629 = vrcp.f32 %v1064_v19  ;;  %2479 = vmatprep.subr.mxu1 %v2635_v3  ;;  %v1088_v24 = vmul.f32 %v2963_v40, %v1080_v17  ;;  %v1679_v17 = vld [vmem:[%s3316_s6] sm:$0xff] }
 0x2e8   :  { %v2624_v21 = vpop.eup %2623 }
 0x2e9   :  { %2477 = vmatmul.mubr.msk.f32.vlgmr.msra.gmra.mxu1 %vm998_vm10, %v1088_v24  ;;  %v1081_v36 = vmul.f32 %v2624_v21, %v3049_v33 }
 0x2ea   :  { %2480 = vmatpush3.msra.mxu1 %v2921_v20  ;;  %v1067_v44 = vpop.xlane.xlu1 %1066  ;;  %2481 = vmatprep.mubr.msk.f32.mxu1 %vm2636_vm0, %v2635_v3 }
 0x2eb   :  { %2631 = vrcp.f32 %v1067_v44  ;;  %2484 = vmatprep.subr.mxu1 %v2635_v3  ;;  %v1089_v14 = vmul.f32 %v2974_v47, %v1081_v36 }
 0x2ec   :  { %v2626_v28 = vpop.eup %2625 }
 0x2ed   :  { %2482 = vmatmul.mubr.msk.f32.vlgmr.msra.gmra.mxu1 %vm998_vm10, %v1089_v14  ;;  %v1082_v40 = vmul.f32 %v2626_v28, %v3053_v42  ;;  %v1694_v42 = vld [vmem:[%s3316_s6 + $0x78] sm:$0xff] }
 0x2ee   :  { %2485 = vmatpush3.msra.mxu1 %v2919_v18  ;;  %v1070_v26 = vpop.xlane.xlu0 %1069  ;;  %2486 = vmatprep.mubr.msk.f32.mxu1 %vm2636_vm0, %v2635_v3  ;;  %v1818_v13 = vpop.permute.xlu1 %1817 }
 0x2ef   :  { %2633 = vrcp.f32 %v1070_v26  ;;  %2494 = vmatprep.subr.mxu1 %v2635_v3  ;;  %v1090_v20 = vmul.f32 %v2987_v55, %v1082_v40 }
 0x2f0   :  { %v2628_v33 = vpop.eup %2627 }
 0x2f1   :  { %v1083_v51 = vmul.f32 %v2628_v33, %v3057_v49  ;;  %2487 = vmatmul.mubr.msk.f32.vlgmr.msra.gmra.mxu1 %vm998_vm10, %v1090_v20  ;;  %v1879_v49 = vld [vmem:[%s3317_s7 + $0x78] sm:$0xff] }
 0x2f2   :  { %2495 = vmatpush3.msra.mxu1 %v2926_v22  ;;  %2496 = vmatprep.mubr.msk.f32.mxu1 %vm2636_vm0, %v2635_v3  ;;  %v1824_v1 = vpop.permute.xlu1 %1823 }
 0x2f3   :  { %v1091_v18 = vmul.f32 %v3002_v11, %v1083_v51  ;;  %2504 = vmatprep.subr.mxu1 %v2635_v3  ;;  %vm1842_vm5 = vcmp.eq.s32.totalorder %v2943_v31, %v1824_v1 }
 0x2f4   :  { %v2630_v47 = vpop.eup %2629 }
 0x2f5   :  { %2492 = vmatmul.mubr.msk.f32.vlgmr.msra.gmra.mxu0 %vm998_vm10, %v1091_v18  ;;  %v1084_v55 = vmul.f32 %v2630_v47, %v3061_v50 }
 0x2f6   :  { %2500 = vmatpush3.msra.mxu0 %v2960_v39  ;;  %2501 = vmatprep.mubr.msk.f32.mxu0 %vm2636_vm0, %v2635_v3  ;;  %v1821_v2 = vpop.permute.xlu0 %1820  ;;  %v1827_v61 = vpop.permute.xlu1 %1826 }
 0x2f7   :  { %v1092_v22 = vmul.f32 %v3012_v23, %v1084_v55  ;;  %2509 = vmatprep.subr.mxu0 %v1694_v42  ;;  %v1693_v23 = vld [vmem:[%s3316_s6 + $0x70] sm:$0xff]  ;;  %vm1843_vm6 = vcmp.eq.s32.totalorder %v2943_v31, %v1827_v61 }
 0x2f8   :  { %v2632_v11 = vpop.eup %2631 }
 0x2f9   :  { %2497 = vmatmul.mubr.msk.f32.vlgmr.msra.gmra.mxu1 %vm998_vm10, %v1092_v22  ;;  %v1085_v27 = vmul.f32 %v2632_v11, %v3065_v53 }
 0x2fa   :  { %2505 = vmatpush3.msra.mxu1 %v2949_v35  ;;  %2506 = vmatprep.mubr.msk.f32.mxu1 %vm2636_vm0, %v2635_v3  ;;  %v1878_v3 = vld [vmem:[%s3317_s7 + $0x70] sm:$0xff]  ;;  %vm1840_vm0 = vcmp.eq.s32.totalorder %v2943_v31, %v1818_v13  ;;  %v1692_v35 = vld [vmem:[%s3316_s6 + $0x68] sm:$0xff]  ;;  %v1830_v6 = vpop.permute.xlu0 %1829  ;;  %v1833_v9 = vpop.permute.xlu1 %1832 }
 0x2fb   :  { %v1093_v39 = vmul.f32 %v3022_v32, %v1085_v27  ;;  %2553 = vmatprep.subr.mxu1 %v1879_v49  ;;  %v2638_v32 = vmov 1.0   ;;  %vm1844_vm7 = vcmp.eq.s32.totalorder %v2943_v31, %v1830_v6  ;;  %vm1845_vm8 = vcmp.eq.s32.totalorder %v2943_v31, %v1833_v9 }
 0x2fc   :  { %v2634_v50 = vpop.eup %2633 }
 0x2fd   :  { %2502 = vmatmul.mubr.msk.f32.vlgmr.msra.gmra.mxu0 %vm998_vm10, %v1093_v39  ;;  %v1086_v59 = vmul.f32 %v2634_v50, %v3069_v56  ;;  %v1876_v56 = vld [vmem:[%s3317_s7 + $0x60] sm:$0xff] }
 0x2fe   :  { %2510 = vmatpush3.xpose.msra.mxu0 %v1694_v42  ;;  %v1836_v30 = vpop.permute.xlu0 %1835  ;;  %v1839_v10 = vpop.permute.xlu1 %1838 }
 0x2ff   :  { %v1094_v53 = vmul.f32 %v3030_v43, %v1086_v59  ;;  %2511 = vmatprep.subr.mxu0 %v1693_v23  ;;  %v1877_v43 = vld [vmem:[%s3317_s7 + $0x68] sm:$0xff]  ;;  %vm1846_vm9 = vcmp.eq.s32.totalorder %v2943_v31, %v1836_v30  ;;  %vm1847_vm11 = vcmp.eq.s32.totalorder %v2943_v31, %v1839_v10 }
 0x301   :  { %2507 = vmatmul.mubr.msk.f32.vlgmr.msra.gmra.mxu1 %vm998_vm10, %v1094_v53  ;;  %vm1841_vm10 = vcmp.eq.s32.totalorder %v2943_v31, %v1821_v2 }
 0x302   :  { %2554 = vmatpush3.msra.mxu1 %v1879_v49  ;;  %2585 = vmatprep.mubr.msk.f32.mxu1 %vm1840_vm0, %v2638_v32  ;;  %v2001_v55 = vpop.permute.xlu1 %2000  ;;  %v1996_v22 = vpop.permute.xlu0 %1995 }
 0x303   :  { %2555 = vmatprep.subr.mxu1 %v1878_v3  ;;  %2512 = vmatpush3.xpose.msra.mxu0 %v1693_v23 }
 0x304   :  { %2556 = vmatpush3.msra.mxu1 %v1878_v3  ;;  %2513 = vmatprep.subr.mxu0 %v1692_v35 }
 0x305   :  { %2557 = vmatprep.subr.mxu1 %v1877_v43 }
 0x306   :  { %2558 = vmatpush3.msra.mxu1 %v1877_v43  ;;  %v2011_v11 = vpop.permute.xlu1 %2010  ;;  %v2006_v49 = vpop.permute.xlu0 %2005 }
 0x307   :  { %2559 = vmatprep.subr.mxu1 %v1876_v56  ;;  %2514 = vmatpush3.xpose.msra.mxu0 %v1692_v35 }
 0x308   :  { %2560 = vmatpush3.msra.mxu1 %v1876_v56  ;;  %2515 = vmatprep.subr.mxu0 %v1691_v29 }
 0x309   :  { %2561 = vmatprep.subr.mxu1 %v1875_v25 }
 0x30a   :  { %2562 = vmatpush3.msra.mxu1 %v1875_v25  ;;  %v2021_v27 = vpop.permute.xlu1 %2020  ;;  %v2016_v50 = vpop.permute.xlu0 %2015 }
 0x30b   :  { %2563 = vmatprep.subr.mxu1 %v1874_v37  ;;  %2516 = vmatpush3.xpose.msra.mxu0 %v1691_v29 }
 0x30c   :  { %2564 = vmatpush3.msra.mxu1 %v1874_v37  ;;  %2517 = vmatprep.subr.mxu0 %v1690_v38 }
 0x30d   :  { %2565 = vmatprep.subr.mxu1 %v1873_v0 }
 0x30e   :  { %2566 = vmatpush3.msra.mxu1 %v1873_v0  ;;  %v2090_v59 = vpop.permute.xlu1 %2089  ;;  %v2085_v43 = vpop.permute.xlu0 %2084 }
 0x30f   :  { %2567 = vmatprep.subr.mxu1 %v1872_v62  ;;  %2518 = vmatpush3.xpose.msra.mxu0 %v1690_v38 }
 0x310   :  { %2568 = vmatpush3.msra.mxu1 %v1872_v62  ;;  %2519 = vmatprep.subr.mxu0 %v1689_v41 }
 0x311   :  { %2569 = vmatprep.subr.mxu1 %v1871_v34 }
 0x312   :  { %2570 = vmatpush3.msra.mxu1 %v1871_v34  ;;  %v2095_v25 = vpop.permute.xlu1 %2094  ;;  %v2026_v34 = vpop.permute.xlu0 %2025 }
 0x313   :  { %2571 = vmatprep.subr.mxu1 %v1870_v45  ;;  %2520 = vmatpush3.xpose.msra.mxu0 %v1689_v41 }
 0x314   :  { %2572 = vmatpush3.msra.mxu1 %v1870_v45  ;;  %2521 = vmatprep.subr.mxu0 %v1688_v48 }
 0x315   :  { %2573 = vmatprep.subr.mxu1 %v1869_v46 }
 0x316   :  { %2574 = vmatpush3.msra.mxu1 %v1869_v46  ;;  %v2031_v61 = vpop.permute.xlu0 %2030 }
 0x317   :  { %2575 = vmatprep.subr.mxu1 %v1868_v63  ;;  %2522 = vmatpush3.xpose.msra.mxu0 %v1688_v48 }
 0x318   :  { %2576 = vmatpush3.msra.mxu1 %v1868_v63  ;;  %2523 = vmatprep.subr.mxu0 %v1687_v52 }
 0x319   :  { %2577 = vmatprep.subr.mxu1 %v1867_v54 }
 0x31a   :  { %2578 = vmatpush3.msra.mxu1 %v1867_v54  ;;  %v2100_v54 = vpop.permute.xlu1 %2099 }
 0x31b   :  { %2579 = vmatprep.subr.mxu1 %v1866_v4  ;;  %2524 = vmatpush3.xpose.msra.mxu0 %v1687_v52 }
 0x31c   :  { %2580 = vmatpush3.msra.mxu1 %v1866_v4  ;;  %2525 = vmatprep.subr.mxu0 %v1686_v57 }
 0x31d   :  { %2581 = vmatprep.subr.mxu1 %v1865_v58 }
 0x31e   :  { %2582 = vmatpush3.msra.mxu1 %v1865_v58  ;;  %v2110_v30 = vpop.permute.xlu1 %2109 }
 0x31f   :  { %2583 = vmatprep.subr.mxu1 %v1864_v60  ;;  %2526 = vmatpush3.xpose.msra.mxu0 %v1686_v57 }
 0x320   :  { %2584 = vmatpush3.msra.mxu1 %v1864_v60  ;;  %2527 = vmatprep.subr.mxu0 %v1685_v7 }
 0x321   :  { %2586 = vmatmul.mubr.msk.f32.vlgmr.msra.gmra.mxu1 %vm1841_vm10, %v2638_v32 }
 0x322   :  { %2588 = vmatprep.mubr.msk.f32.mxu1 %vm1842_vm5, %v2638_v32 }
 0x323   :  { %2528 = vmatpush3.xpose.msra.mxu0 %v1685_v7 }
 0x324   :  { %2529 = vmatprep.subr.mxu0 %v1684_v8 }
 0x325   :  { %2589 = vmatmul.mubr.msk.f32.gmra.mxu1 %vm1843_vm6, %v2638_v32 }
 0x326   :  { %2591 = vmatprep.mubr.msk.f32.mxu1 %vm1844_vm7, %v2638_v32 }
 0x327   :  { %2530 = vmatpush3.xpose.msra.mxu0 %v1684_v8 }
 0x328   :  { %2531 = vmatprep.subr.mxu0 %v1683_v5 }
 0x329   :  { %2592 = vmatmul.mubr.msk.f32.gmra.mxu1 %vm1845_vm8, %v2638_v32 }
 0x32a   :  { %2594 = vmatprep.mubr.msk.f32.mxu1 %vm1846_vm9, %v2638_v32 }
 0x32b   :  { %2532 = vmatpush3.xpose.msra.mxu0 %v1683_v5 }
 0x32c   :  { %2533 = vmatprep.subr.mxu0 %v1682_v12 }
 0x32d   :  { %2595 = vmatmul.mubr.msk.f32.gmra.mxu1 %vm1847_vm11, %v2638_v32 }
 0x32f   :  { %2534 = vmatpush3.xpose.msra.mxu0 %v1682_v12 }
 0x330   :  { %2535 = vmatprep.subr.mxu0 %v1681_v15 }
 0x333   :  { %2536 = vmatpush3.xpose.msra.mxu0 %v1681_v15 }
 0x334   :  { %2537 = vmatprep.subr.mxu0 %v1680_v16 }
 0x337   :  { %2538 = vmatpush3.xpose.msra.mxu0 %v1680_v16 }
 0x338   :  { %2539 = vmatprep.subr.mxu0 %v1679_v17 }
 0x33b   :  { %2540 = vmatpush3.xpose.msra.mxu0 %v1679_v17 }
 0x3a5   :  { %v1164_v31 = vpop.f32.mrf.mxu1 }
 0x3a6   :  { %2541 = vmatprep.mubr.f32.mxu0 %v1164_v31 }
 0x3a7   :  { %v2473_v19 = vpop.f32.mrf.mxu1 }
 0x3a9   :  { %v1237_v24 = vpop.f32.mrf.mxu1 }
 0x3aa   :  { %2542 = vmatmul.mubr.f32.vlgmr.msra.gmra.mxu0 %v1237_v24 }
 0x3ab   :  { %v2478_v21 = vpop.f32.mrf.mxu1 }
 0x3ad   :  { %v1310_v36 = vpop.f32.mrf.mxu1 }
 0x3ae   :  { %2544 = vmatprep.mubr.f32.mxu0 %v1310_v36 }
 0x3af   :  { %v2483_v44 = vpop.f32.mrf.mxu1 }
 0x3b1   :  { %v1383_v14 = vpop.f32.mrf.mxu1 }
 0x3b2   :  { %2545 = vmatmul.mubr.f32.gmra.mxu0 %v1383_v14  ;;  %v2105_v14 = vpop.permute.xlu0 %2104 }
 0x3b3   :  { %v2488_v28 = vpop.f32.mrf.mxu1 }
 0x3b5   :  { %v1456_v40 = vpop.f32.mrf.mxu0 }
 0x3b6   :  { %2547 = vmatprep.mubr.f32.mxu0 %v1456_v40 }
 0x3b7   :  { %v2493_v26 = vpop.f32.mrf.mxu0 }
 0x3b9   :  { %v1529_v20 = vpop.f32.mrf.mxu1 }
 0x3ba   :  { %2548 = vmatmul.mubr.f32.gmra.mxu0 %v1529_v20 }
 0x3bb   :  { %v2498_v33 = vpop.f32.mrf.mxu1 }
 0x3bd   :  { %v1602_v51 = vpop.f32.mrf.mxu0 }
 0x3be   :  { %2550 = vmatprep.mubr.f32.mxu0 %v1602_v51 }
 0x3bf   :  { %v2503_v18 = vpop.f32.mrf.mxu0 }
 0x3c1   :  { %v1675_v47 = vpop.f32.mrf.mxu1 }
 0x3c2   :  { %2551 = vmatmul.mubr.f32.gmra.mxu0 %v1675_v47 }
 0x3c3   :  { %v2508_v42 = vpop.f32.mrf.mxu1 }
 0x3e1   :  { %v2587_v39 = vpop.f32.mrf.mxu1 }
 0x3e2   :  { %v2034_v3 = vadd.f32 %v2587_v39, %v2001_v55 }
 0x3e3   :  { %v1946_v23 = vpop.f32.mrf.mxu1 }
 0x3e4   :  { %v2033_v53 = vadd.f32 %v1996_v22, %v1946_v23 }
 0x3e5   :  { %v2590_v35 = vpop.f32.mrf.mxu1 }
 0x3e6   :  { %v2036_v0 = vadd.f32 %v2590_v35, %v2011_v11 }
 0x3e7   :  { %v1956_v37 = vpop.f32.mrf.mxu1 }
 0x3e8   :  { %v2035_v45 = vadd.f32 %v2006_v49, %v1956_v37 }
 0x3e9   :  { %v2593_v46 = vpop.f32.mrf.mxu1 }
 0x3ea   :  { %v2038_v7 = vadd.f32 %v2593_v46, %v2021_v27  ;;  %v2120_v27 = vpop.permute.xlu1 %2119 }
 0x3eb   :  { %v1966_v58 = vpop.f32.mrf.mxu1 }
 0x3ec   :  { %v2037_v15 = vadd.f32 %v2016_v50, %v1966_v58 }
 0x3ed   :  { %v2596_v16 = vpop.f32.mrf.mxu1 }
 0x3ee   :  { %v2040_v33 = vadd.f32 %v2596_v16, %v2031_v61 }
 0x3ef   :  { %v1976_v40 = vpop.f32.mrf.mxu1 }
 0x3f0   :  { %v2039_v11 = vadd.f32 %v2026_v34, %v1976_v40 }
 0x46a   :  { %v2543_v13 = vpop.f32.mrf.mxu0 }
 0x46b   :  { %v2075_v29 = vmul.f32 %v2543_v13, %v2034_v3  ;;  %v2115_v3 = vpop.permute.xlu0 %2114 }
 0x46c   :  { %v1761_v32 = vpop.f32.mrf.mxu0 }
 0x46d   :  { %v2074_v56 = vmul.f32 %v2033_v53, %v1761_v32  ;;  %v2123_v62 = vmul.f32 %v2090_v59, %v2075_v29 }
 0x46f   :  { %v2122_v38 = vmul.f32 %v2085_v43, %v2074_v56  ;;  %v2136_v4 = vrot.slane %v2123_v62, 4 }
 0x471   :  { %v2130_v63 = vrot.slane %v2122_v38, 4  ;;  %v2137_v8 = vadd.f32 %v2136_v4, %v2123_v62 }
 0x472   :  { %v2546_v41 = vpop.f32.mrf.mxu0 }
 0x473   :  { %v2077_v48 = vmul.f32 %v2546_v41, %v2036_v0  ;;  %v2131_v60 = vadd.f32 %v2130_v63, %v2122_v38  ;;  %v2138_v21 = vrot.slane %v2137_v8, 2 }
 0x474   :  { %v1771_v52 = vpop.f32.mrf.mxu0 }
 0x475   :  { %v2076_v1 = vmul.f32 %v2035_v45, %v1771_v52  ;;  %v2125_v57 = vmul.f32 %v2100_v54, %v2077_v48  ;;  %v2132_v17 = vrot.slane %v2131_v60, 2  ;;  %v2139_v18 = vadd.f32 %v2138_v21, %v2137_v8 }
 0x477   :  { %v2124_v2 = vmul.f32 %v2095_v25, %v2076_v1  ;;  %v2148_v9 = vrot.slane %v2125_v57, 4  ;;  %v2133_v26 = vadd.f32 %v2132_v17, %v2131_v60  ;;  %v2140_v35 = vrot.slane %v2139_v18, 1 }
 0x479   :  { %v2142_v6 = vrot.slane %v2124_v2, 4  ;;  %v2149_v36 = vadd.f32 %v2148_v9, %v2125_v57  ;;  %v2134_v39 = vrot.slane %v2133_v26, 1  ;;  %v2141_v34 = vadd.f32 %v2140_v35, %v2139_v18 }
 0x47a   :  { %v2549_v5 = vpop.f32.mrf.mxu0 }
 0x47b   :  { %v2143_v10 = vadd.f32 %v2142_v6, %v2124_v2  ;;  %v2079_v12 = vmul.f32 %v2549_v5, %v2038_v7  ;;  %v2150_v47 = vrot.slane %v2149_v36, 2  ;;  %v2135_v37 = vadd.f32 %v2134_v39, %v2133_v26 }
 0x47c   :  { %v1781_v31 = vpop.f32.mrf.mxu0 }
 0x47d   :  { %v2144_v19 = vrot.slane %v2143_v10, 2  ;;  %v2127_v24 = vmul.f32 %v2110_v30, %v2079_v12  ;;  %v2078_v44 = vmul.f32 %v2037_v15, %v1781_v31  ;;  %v2151_v32 = vadd.f32 %v2150_v47, %v2149_v36 }
 0x47e   :  { %v2187_v54 = vsel %vm2186_vm12, %v2141_v34, %v2135_v37 }
 0x47f   :  { %v2160_v28 = vrot.slane %v2127_v24, 4  ;;  %v2126_v20 = vmul.f32 %v2105_v14, %v2078_v44  ;;  %v2145_v51 = vadd.f32 %v2144_v19, %v2143_v10  ;;  %v2152_v45 = vrot.slane %v2151_v32, 1 }
 0x481   :  { %v2161_v42 = vadd.f32 %v2160_v28, %v2127_v24  ;;  %v2154_v55 = vrot.slane %v2126_v20, 4  ;;  %v2146_v59 = vrot.slane %v2145_v51, 1  ;;  %v2153_v58 = vadd.f32 %v2152_v45, %v2151_v32 }
 0x482   :  { %v2552_v22 = vpop.f32.mrf.mxu0 }
 0x483   :  { %v2081_v49 = vmul.f32 %v2552_v22, %v2040_v33  ;;  %v2155_v50 = vadd.f32 %v2154_v55, %v2126_v20  ;;  %v2162_v43 = vrot.slane %v2161_v42, 2  ;;  %v2147_v0 = vadd.f32 %v2146_v59, %v2145_v51 }
 0x484   :  { %v1791_v23 = vpop.f32.mrf.mxu0 }
 0x485   :  { %v2129_v13 = vmul.f32 %v2120_v27, %v2081_v49  ;;  %v2080_v53 = vmul.f32 %v2039_v11, %v1791_v23  ;;  %v2156_v56 = vrot.slane %v2155_v50, 2  ;;  %v2163_v48 = vadd.f32 %v2162_v43, %v2161_v42 }
 0x486   :  { %v2189_v1 = vsel %vm2188_vm13, %v2147_v0, %v2187_v54 }
 0x487   :  { %v2172_v29 = vrot.slane %v2129_v13, 4  ;;  %v2128_v25 = vmul.f32 %v2115_v3, %v2080_v53  ;;  %v2157_v38 = vadd.f32 %v2156_v56, %v2155_v50  ;;  %v2164_v60 = vrot.slane %v2163_v48, 1 }
 0x488   :  { %v2191_v7 = vsel %vm2190_vm14, %v2153_v58, %v2189_v1 }
 0x489   :  { %v2173_v62 = vadd.f32 %v2172_v29, %v2129_v13  ;;  %v2166_v41 = vrot.slane %v2128_v25, 4  ;;  %v2158_v46 = vrot.slane %v2157_v38, 1  ;;  %v2165_v5 = vadd.f32 %v2164_v60, %v2163_v48 }
 0x48b   :  { %v2174_v63 = vrot.slane %v2173_v62, 2  ;;  %v2167_v52 = vadd.f32 %v2166_v41, %v2128_v25  ;;  %v2159_v4 = vadd.f32 %v2158_v46, %v2157_v38 }
 0x48d   :  { %v2175_v57 = vadd.f32 %v2174_v63, %v2173_v62  ;;  %v2168_v2 = vrot.slane %v2167_v52, 2  ;;  %v2193_v8 = vsel %vm2192_vm15, %v2159_v4, %v2191_v7 }
 0x48e   :  { %v2195_v12 = vsel %vm2194_vm1, %v2165_v5, %v2193_v8 }
 0x48f   :  { %v2169_v61 = vadd.f32 %v2168_v2, %v2167_v52  ;;  %v2176_v6 = vrot.slane %v2175_v57, 1 }
 0x491   :  { %v2170_v9 = vrot.slane %v2169_v61, 1  ;;  %v2177_v10 = vadd.f32 %v2176_v6, %v2175_v57 }
 0x493   :  { %v2171_v30 = vadd.f32 %v2170_v9, %v2169_v61 }
 0x495   :  { %v2197_v15 = vsel %vm2196_vm2, %v2171_v30, %v2195_v12 }
 0x496   :  { %v2199_v16 = vsel %vm2198_vm3, %v2177_v10, %v2197_v15 }
 0x497   :  { %2201 = vst [vmem:[%s3318_s9] sm:$0xff] %v2199_v16 }

</bundles_post_ra>
